<compile_context>
chip_gen: v6e
topology: v6e:2x2x1
jax: 0.10.0
libtpu: 0.0.40
codegen_flags: <defaults>
</compile_context>

<pallas_src>
import math
from functools import partial

import numpy as np
import jax
import jax.numpy as jnp
from jax.experimental import pallas as pl
from jax.experimental.pallas import tpu as pltpu


# ----------------------------------------------------------------------------
# Static model config (cfg.* equivalents) -- kept out of the jitted pytree.
# ----------------------------------------------------------------------------
CFG = dict(in_chans=4, img=16, patch=8, dim=32, depth=2, heads=4,
           mlp_hidden=64, num_classes=10, camera_num=3, sie_xishu=3.0)

_LN_EPS = 1e-6    # timm ViT LayerNorm eps
_BN_EPS = 1e-5    # nn.BatchNorm1d default eps
_NEG = -1e9       # additive attention mask value (per-image attention)

# rows of the per-block (8, lanes) LN/bias slab
_R_LN1G, _R_LN1B, _R_QKVB, _R_PROJB, _R_LN2G, _R_LN2B, _R_FC1B, _R_FC2B = range(8)


# ----------------------------------------------------------------------------
# Helpers
# ----------------------------------------------------------------------------
def _const_spec(shape):
    """Full-array block, constant index map (whole array VMEM-resident)."""
    n = len(shape)
    return pl.BlockSpec(tuple(shape), lambda i, _n=n: (0,) * _n)


def _layernorm(v, g, b, eps=_LN_EPS):
    mu = jnp.mean(v, axis=-1, keepdims=True)
    var = jnp.mean(jnp.square(v - mu), axis=-1, keepdims=True)
    return (v - mu) * jax.lax.rsqrt(var + eps) * g + b


# ----------------------------------------------------------------------------
# Single fused kernel: embeddings -> depth x transformer block -> final LN
#                      -> BatchNorm1d bottleneck -> padded classifier
# ----------------------------------------------------------------------------
def _make_fused_kernel(depth, heads, D, Hm, BNrows, training):
    dh = D // heads
    scale = 1.0 / math.sqrt(dh)

    def kernel(patches_ref, patch_w_ref, emb_ref, mask_ref,
               qkv_w_ref, proj_w_ref, fc1_w_ref, fc2_w_ref, vec_ref,
               lnf_ref, bn_ref, cls_w_ref,
               bb_ref, feat_ref, cls_ref):
        # ---- patch embedding + cls / pos / SIE camera embedding -------------
        # Row layout: [b0 patch tokens..., b1 patch tokens..., b0 cls, b1 cls].
        # The cls rows of `patches_ref` are zero, so one matmul + one add
        # builds the whole (T, D) token stream (no in-kernel interleaving).
        x = jnp.dot(patches_ref[...], patch_w_ref[...],
                    preferred_element_type=jnp.float32) + emb_ref[...]   # (T, D)
        mask = mask_ref[...]                                             # (T, T)

        # ---- transformer blocks (depth unrolled; batch folded into rows) ----
        for d in range(depth):
            vec = vec_ref[d]                                   # (8, lanes) slab
            ln1_g = vec[_R_LN1G:_R_LN1G + 1, :D]
            ln1_b = vec[_R_LN1B:_R_LN1B + 1, :D]
            qkv_b = vec[_R_QKVB:_R_QKVB + 1, :3 * D]
            proj_b = vec[_R_PROJB:_R_PROJB + 1, :D]
            ln2_g = vec[_R_LN2G:_R_LN2G + 1, :D]
            ln2_b = vec[_R_LN2B:_R_LN2B + 1, :D]
            fc1_b = vec[_R_FC1B:_R_FC1B + 1, :Hm]
            fc2_b = vec[_R_FC2B:_R_FC2B + 1, :D]

            # attention sub-block
            h = _layernorm(x, ln1_g, ln1_b)
            qkv = jnp.dot(h, qkv_w_ref[d],
                          preferred_element_type=jnp.float32) + qkv_b    # (T, 3D)
            q = qkv[:, 0:D] * scale            # fold 1/sqrt(dh) into q
            k = qkv[:, D:2 * D]
            v = qkv[:, 2 * D:3 * D]

            head_outs = []
            for hh in range(heads):
                sl = slice(hh * dh, (hh + 1) * dh)
                s = jax.lax.dot_general(q[:, sl], k[:, sl],
                                        (((1,), (1,)), ((), ())),
                                        preferred_element_type=jnp.float32)  # (T, T)
                s = s + mask                   # per-image block mask
                m = jnp.max(s, axis=-1, keepdims=True)
                p = jnp.exp(s - m)
                p = p / jnp.sum(p, axis=-1, keepdims=True)    # exact softmax
                head_outs.append(jnp.dot(p, v[:, sl],
                                         preferred_element_type=jnp.float32))
            attn = jnp.concatenate(head_outs, axis=-1)         # (T, D) lane concat
            x = x + jnp.dot(attn, proj_w_ref[d],
                            preferred_element_type=jnp.float32) + proj_b

            # MLP sub-block
            h = _layernorm(x, ln2_g, ln2_b)
            h = jnp.dot(h, fc1_w_ref[d],
                        preferred_element_type=jnp.float32) + fc1_b
            # TODO(synk): nn.GELU defaults to exact erf; tanh approximation used here.
            h = jax.nn.gelu(h, approximate=True)
            x = x + jnp.dot(h, fc2_w_ref[d],
                            preferred_element_type=jnp.float32) + fc2_b

        # ---- final LayerNorm (backbone output) -------------------------------
        x = _layernorm(x, lnf_ref[0:1, :], lnf_ref[1:2, :])
        bb_ref[...] = x.astype(bb_ref.dtype)

        # ---- BatchNorm1d bottleneck + bias-free classifier on cls rows -------
        gf = x[BNrows:, :]                                     # (B, D) cls tokens
        if training:
            mu = jnp.mean(gf, axis=0, keepdims=True)
            var = jnp.mean(jnp.square(gf - mu), axis=0, keepdims=True)  # biased
        else:
            mu, var = bn_ref[2:3, :], bn_ref[3:4, :]           # running stats
        feat = (gf - mu) * jax.lax.rsqrt(var + _BN_EPS) * bn_ref[0:1, :] + bn_ref[1:2, :]
        feat_ref[...] = feat.astype(feat_ref.dtype)
        cls_ref[...] = jnp.dot(feat, cls_w_ref[...],
                               preferred_element_type=jnp.float32).astype(cls_ref.dtype)

    return kernel


# ----------------------------------------------------------------------------
# build_transformer.forward  (ID_LOSS_TYPE='softmax' -> plain classifier)
# ----------------------------------------------------------------------------
def build_transformer_forward(cfg, params, x, cam_label=0, training=True,
                              mode=1, neck_feat="after"):
    B, C, H, W = x.shape
    P, D, heads, depth = cfg["patch"], cfg["dim"], cfg["heads"], cfg["depth"]
    Hm, num_classes = cfg["mlp_hidden"], cfg["num_classes"]
    nH, nW = H // P, W // P
    N = nH * nW
    S = N + 1
    BNrows = B * N
    T = B * S
    CPP = C * P * P
    p = params

    # patch extraction (one XLA layout op): conv(k=P, stride=P) == rows @ W
    patches = x.reshape(B, C, nH, P, nW, P)
    patches = jnp.transpose(patches, (0, 2, 4, 1, 3, 5)).reshape(BNrows, CPP)
    # cls rows appended as zeros so the patch matmul also "produces" cls tokens
    patches_pad = jnp.concatenate(
        [patches, jnp.zeros((B, CPP), patches.dtype)], axis=0)          # (T, CPP)

    # additive embeddings: pos + SIE camera embed (+ patch bias for patch rows)
    cam_vec = cfg["sie_xishu"] * p["cam_embed"][cam_label]              # (1, D)
    pos = p["pos_embed"][0]                                             # (S, D)
    patch_add = pos[1:] + cam_vec + p["patch_b"][None, :]               # (N, D)
    cls_add = p["cls_token"][0] + pos[0:1] + cam_vec                    # (1, D)
    emb_full = jnp.concatenate([jnp.tile(patch_add, (B, 1)),
                                jnp.tile(cls_add, (B, 1))], axis=0)     # (T, D)

    # per-image attention mask (compile-time constant): row layout is
    # [b0 patches, b1 patches, b0 cls, b1 cls]
    bid = np.concatenate([np.repeat(np.arange(B), N), np.arange(B)])
    attn_mask = jnp.asarray(
        np.where(bid[:, None] == bid[None, :], 0.0, _NEG), np.float32)  # (T, T)

    ops = [patches_pad, p["patch_w"], emb_full, attn_mask,
           p["qkv_w"], p["proj_w"], p["fc1_w"], p["fc2_w"], p["vec"],
           p["lnf"], p["bn"], p["cls_w_pad"]]
    Cp = p["cls_w_pad"].shape[1]

    backbone_out, feat, cls_pad = pl.pallas_call(
        _make_fused_kernel(depth, heads, D, Hm, BNrows, training),
        grid=(1,),
        in_specs=[_const_spec(o.shape) for o in ops],
        out_specs=(_const_spec((T, D)), _const_spec((B, D)), _const_spec((B, Cp))),
        out_shape=(jax.ShapeDtypeStruct((T, D), jnp.float32),
                   jax.ShapeDtypeStruct((B, D), jnp.float32),
                   jax.ShapeDtypeStruct((B, Cp), jnp.float32)),
        compiler_params=pltpu.CompilerParams(dimension_semantics=("arbitrary",)),
    )(*ops)

    mid_fea_f = backbone_out[:BNrows].reshape(B, N, D)   # patch tokens (B, N, D)
    global_feat = backbone_out[BNrows:]                  # cls tokens   (B, D)
    cls_score = cls_pad[:, :num_classes]
    # TODO(synk): BatchNorm running_mean/running_var are not updated in training
    # mode (PyTorch updates them as a forward side effect).

    if training:
        if mode == 0:
            return cls_score, global_feat
        return mid_fea_f, cls_score, global_feat
    feat_out = feat if neck_feat == "after" else global_feat
    if mode == 0:
        return feat_out
    return mid_fea_f, feat_out


# ----------------------------------------------------------------------------
# Deterministic parameter init (shapes implied by __init__; synthetic weights)
# Per-block weights pre-stacked into (depth, ...) slabs; LN/bias vectors packed
# into one (depth, 8, lanes) slab.  Everything f32.
# ----------------------------------------------------------------------------
def init_params(key, cfg):
    in_chans, img, patch = cfg["in_chans"], cfg["img"], cfg["patch"]
    dim, depth, heads = cfg["dim"], cfg["depth"], cfg["heads"]
    mlp_hidden, num_classes = cfg["mlp_hidden"], cfg["num_classes"]
    camera_num = cfg["camera_num"]

    num_patches = (img // patch) * (img // patch)
    S = num_patches + 1
    CPP = in_chans * patch * patch

    ks = iter(jax.random.split(key, 12))

    def nrm(shape, std):
        return std * jax.random.normal(next(ks), shape, jnp.float32)

    # LN/bias slab: rows = ln1_g, ln1_b, qkv_b, proj_b, ln2_g, ln2_b, fc1_b, fc2_b
    vpad = int(np.ceil(max(128, 3 * dim, mlp_hidden) / 128) * 128)
    vec = jnp.zeros((depth, 8, vpad), jnp.float32)
    vec = vec.at[:, _R_LN1G, :dim].set(1.0)
    vec = vec.at[:, _R_LN2G, :dim].set(1.0)

    # classifier = Linear(in_planes, num_classes, bias=False), std=0.001;
    # stored pre-transposed and zero-padded to a 128-lane output
    c_pad = max(128, ((num_classes + 127) // 128) * 128)
    cls_w = jnp.zeros((dim, c_pad), jnp.float32).at[:, :num_classes].set(
        nrm((dim, num_classes), 0.001))

    return dict(
        patch_w=nrm((CPP, dim), 0.02),
        patch_b=jnp.zeros((dim,), jnp.float32),
        cls_token=nrm((1, 1, dim), 0.02),
        pos_embed=nrm((1, S, dim), 0.02),
        cam_embed=nrm((camera_num, 1, dim), 0.02),       # SIE camera embedding
        qkv_w=nrm((depth, dim, 3 * dim), 0.02),
        proj_w=nrm((depth, dim, dim), 0.02),
        fc1_w=nrm((depth, dim, mlp_hidden), 0.02),
        fc2_w=nrm((depth, mlp_hidden, dim), 0.02),
        vec=vec,
        lnf=jnp.concatenate([jnp.ones((1, dim)), jnp.zeros((1, dim))],
                            axis=0).astype(jnp.float32),
        # bottleneck = BatchNorm1d, kaiming init -> weight=1, bias=0 (frozen);
        # rows: gamma, beta, running_mean, running_var
        bn=jnp.concatenate([jnp.ones((1, dim)), jnp.zeros((1, dim)),
                            jnp.zeros((1, dim)), jnp.ones((1, dim))],
                           axis=0).astype(jnp.float32),
        cls_w_pad=cls_w,
    )


if __name__ == "__main__":
    key = jax.random.PRNGKey(0)
    pkey, xkey = jax.random.split(key)
    params = init_params(pkey, CFG)

    # NCHW input, small shapes: batch=2, channels=4, spatial=16x16
    x = jax.random.normal(xkey, (2, CFG["in_chans"], CFG["img"], CFG["img"]),
                          jnp.float32)

    fwd = jax.jit(partial(build_transformer_forward, CFG,
                          cam_label=0, training=True, mode=1))

    mid_fea_f, cls_score, global_feat = fwd(params, x)
    jax.block_until_ready((mid_fea_f, cls_score, global_feat))
    assert mid_fea_f.shape == (2, 4, 32)
    assert cls_score.shape == (2, 10)
    assert global_feat.shape == (2, 32)
    print("KERNEL_OK")
</pallas_src>

<mosaic_0001>
module attributes {stable_mosaic.version = 11 : i64} {
  func.func @kernel(%arg0: i32, %arg1: memref<10x256xf32, #tpu.memory_space<vmem>>, %arg2: memref<256x32xf32, #tpu.memory_space<vmem>>, %arg3: memref<10x32xf32, #tpu.memory_space<vmem>>, %arg4: memref<10x10xf32, #tpu.memory_space<vmem>>, %arg5: memref<2x32x96xf32, #tpu.memory_space<vmem>>, %arg6: memref<2x32x32xf32, #tpu.memory_space<vmem>>, %arg7: memref<2x32x64xf32, #tpu.memory_space<vmem>>, %arg8: memref<2x64x32xf32, #tpu.memory_space<vmem>>, %arg9: memref<2x8x128xf32, #tpu.memory_space<vmem>>, %arg10: memref<2x32xf32, #tpu.memory_space<vmem>>, %arg11: memref<4x32xf32, #tpu.memory_space<vmem>>, %arg12: memref<32x128xf32, #tpu.memory_space<vmem>>, %arg13: memref<10x32xf32, #tpu.memory_space<vmem>>, %arg14: memref<2x32xf32, #tpu.memory_space<vmem>>, %arg15: memref<2x128xf32, #tpu.memory_space<vmem>>) attributes {dimension_semantics = [#tpu.dimension_semantics<arbitrary>], iteration_bounds = array<i64: 1>, scalar_prefetch = 0 : i64, scratch_operands = 0 : i64, tpu.core_type = #tpu.core_type<tc>, window_params = [{pipeline_mode = #tpu.pipeline_mode<synchronous>, transform_indices = @transform_0, window_bounds = array<i64: 10, 256>}, {pipeline_mode = #tpu.pipeline_mode<synchronous>, transform_indices = @transform_1, window_bounds = array<i64: 256, 32>}, {pipeline_mode = #tpu.pipeline_mode<synchronous>, transform_indices = @transform_2, window_bounds = array<i64: 10, 32>}, {pipeline_mode = #tpu.pipeline_mode<synchronous>, transform_indices = @transform_3, window_bounds = array<i64: 10, 10>}, {pipeline_mode = #tpu.pipeline_mode<synchronous>, transform_indices = @transform_4, window_bounds = array<i64: 2, 32, 96>}, {pipeline_mode = #tpu.pipeline_mode<synchronous>, transform_indices = @transform_5, window_bounds = array<i64: 2, 32, 32>}, {pipeline_mode = #tpu.pipeline_mode<synchronous>, transform_indices = @transform_6, window_bounds = array<i64: 2, 32, 64>}, {pipeline_mode = #tpu.pipeline_mode<synchronous>, transform_indices = @transform_7, window_bounds = array<i64: 2, 64, 32>}, {pipeline_mode = #tpu.pipeline_mode<synchronous>, transform_indices = @transform_8, window_bounds = array<i64: 2, 8, 128>}, {pipeline_mode = #tpu.pipeline_mode<synchronous>, transform_indices = @transform_9, window_bounds = array<i64: 2, 32>}, {pipeline_mode = #tpu.pipeline_mode<synchronous>, transform_indices = @transform_10, window_bounds = array<i64: 4, 32>}, {pipeline_mode = #tpu.pipeline_mode<synchronous>, transform_indices = @transform_11, window_bounds = array<i64: 32, 128>}, {pipeline_mode = #tpu.pipeline_mode<synchronous>, transform_indices = @transform_12, window_bounds = array<i64: 10, 32>}, {pipeline_mode = #tpu.pipeline_mode<synchronous>, transform_indices = @transform_13, window_bounds = array<i64: 2, 32>}, {pipeline_mode = #tpu.pipeline_mode<synchronous>, transform_indices = @transform_14, window_bounds = array<i64: 2, 128>}]} {
    %c0 = arith.constant 0 : index
    %c0_0 = arith.constant 0 : index
    %0 = vector.load %arg1[%c0, %c0_0] : memref<10x256xf32, #tpu.memory_space<vmem>>, vector<10x256xf32>
    %c0_1 = arith.constant 0 : index
    %c0_2 = arith.constant 0 : index
    %1 = vector.load %arg2[%c0_1, %c0_2] : memref<256x32xf32, #tpu.memory_space<vmem>>, vector<256x32xf32>
    %cst = arith.constant dense<0.000000e+00> : vector<10x32xf32>
    %2 = tpu.matmul %0, %1, %cst {dimension_numbers = #tpu.dot_dimension_numbers<[1], [0], [0], [1], [0, 0, 1, 1], [], []>} : vector<10x256xf32>, vector<256x32xf32>, vector<10x32xf32> -> vector<10x32xf32>
    %c0_3 = arith.constant 0 : index
    %c0_4 = arith.constant 0 : index
    %3 = vector.load %arg3[%c0_3, %c0_4] : memref<10x32xf32, #tpu.memory_space<vmem>>, vector<10x32xf32>
    %4 = arith.addf %2, %3 : vector<10x32xf32>
    %c0_5 = arith.constant 0 : index
    %c0_6 = arith.constant 0 : index
    %5 = vector.load %arg4[%c0_5, %c0_6] : memref<10x10xf32, #tpu.memory_space<vmem>>, vector<10x10xf32>
    %c0_7 = arith.constant 0 : index
    %c0_8 = arith.constant 0 : index
    %c0_9 = arith.constant 0 : index
    %6 = vector.load %arg9[%c0_7, %c0_8, %c0_9] : memref<2x8x128xf32, #tpu.memory_space<vmem>>, vector<1x8x128xf32>
    %7 = vector.shape_cast %6 : vector<1x8x128xf32> to vector<8x128xf32>
    %8 = vector.extract_strided_slice %7 {offsets = [0, 0], sizes = [1, 32], strides = [1, 1]} : vector<8x128xf32> to vector<1x32xf32>
    %9 = vector.extract_strided_slice %7 {offsets = [1, 0], sizes = [1, 32], strides = [1, 1]} : vector<8x128xf32> to vector<1x32xf32>
    %10 = vector.extract_strided_slice %7 {offsets = [2, 0], sizes = [1, 96], strides = [1, 1]} : vector<8x128xf32> to vector<1x96xf32>
    %11 = vector.extract_strided_slice %7 {offsets = [3, 0], sizes = [1, 32], strides = [1, 1]} : vector<8x128xf32> to vector<1x32xf32>
    %12 = vector.extract_strided_slice %7 {offsets = [4, 0], sizes = [1, 32], strides = [1, 1]} : vector<8x128xf32> to vector<1x32xf32>
    %13 = vector.extract_strided_slice %7 {offsets = [5, 0], sizes = [1, 32], strides = [1, 1]} : vector<8x128xf32> to vector<1x32xf32>
    %14 = vector.extract_strided_slice %7 {offsets = [6, 0], sizes = [1, 64], strides = [1, 1]} : vector<8x128xf32> to vector<1x64xf32>
    %15 = vector.extract_strided_slice %7 {offsets = [7, 0], sizes = [1, 32], strides = [1, 1]} : vector<8x128xf32> to vector<1x32xf32>
    %cst_10 = arith.constant dense<0.000000e+00> : vector<10xf32>
    %16 = vector.multi_reduction <add>, %4, %cst_10 [1] : vector<10x32xf32> to vector<10xf32>
    %17 = vector.shape_cast %16 : vector<10xf32> to vector<10x1xf32>
    %cst_11 = arith.constant 3.200000e+01 : f32
    %18 = vector.broadcast %cst_11 : f32 to vector<10x1xf32>
    %19 = arith.divf %17, %18 : vector<10x1xf32>
    %20 = vector.broadcast %19 : vector<10x1xf32> to vector<10x32xf32>
    %21 = arith.subf %4, %20 : vector<10x32xf32>
    %22 = arith.mulf %21, %21 : vector<10x32xf32>
    %cst_12 = arith.constant dense<0.000000e+00> : vector<10xf32>
    %23 = vector.multi_reduction <add>, %22, %cst_12 [1] : vector<10x32xf32> to vector<10xf32>
    %24 = vector.shape_cast %23 : vector<10xf32> to vector<10x1xf32>
    %cst_13 = arith.constant 3.200000e+01 : f32
    %25 = vector.broadcast %cst_13 : f32 to vector<10x1xf32>
    %26 = arith.divf %24, %25 : vector<10x1xf32>
    %27 = vector.broadcast %19 : vector<10x1xf32> to vector<10x32xf32>
    %28 = arith.subf %4, %27 : vector<10x32xf32>
    %cst_14 = arith.constant 9.99999997E-7 : f32
    %29 = vector.broadcast %cst_14 : f32 to vector<10x1xf32>
    %30 = arith.addf %26, %29 : vector<10x1xf32>
    %31 = math.rsqrt %30 : vector<10x1xf32>
    %32 = vector.broadcast %31 : vector<10x1xf32> to vector<10x32xf32>
    %33 = arith.mulf %28, %32 : vector<10x32xf32>
    %34 = vector.broadcast %8 : vector<1x32xf32> to vector<10x32xf32>
    %35 = arith.mulf %33, %34 : vector<10x32xf32>
    %36 = vector.broadcast %9 : vector<1x32xf32> to vector<10x32xf32>
    %37 = arith.addf %35, %36 : vector<10x32xf32>
    %c0_15 = arith.constant 0 : index
    %c0_16 = arith.constant 0 : index
    %c0_17 = arith.constant 0 : index
    %38 = vector.load %arg5[%c0_15, %c0_16, %c0_17] : memref<2x32x96xf32, #tpu.memory_space<vmem>>, vector<1x32x96xf32>
    %39 = vector.shape_cast %38 : vector<1x32x96xf32> to vector<32x96xf32>
    %cst_18 = arith.constant dense<0.000000e+00> : vector<10x96xf32>
    %40 = tpu.matmul %37, %39, %cst_18 {dimension_numbers = #tpu.dot_dimension_numbers<[1], [0], [0], [1], [0, 0, 1, 1], [], []>} : vector<10x32xf32>, vector<32x96xf32>, vector<10x96xf32> -> vector<10x96xf32>
    %41 = vector.broadcast %10 : vector<1x96xf32> to vector<10x96xf32>
    %42 = arith.addf %40, %41 : vector<10x96xf32>
    %43 = vector.extract_strided_slice %42 {offsets = [0, 0], sizes = [10, 32], strides = [1, 1]} : vector<10x96xf32> to vector<10x32xf32>
    %cst_19 = arith.constant 0.353553385 : f32
    %44 = vector.broadcast %cst_19 : f32 to vector<10x32xf32>
    %45 = arith.mulf %43, %44 : vector<10x32xf32>
    %46 = vector.extract_strided_slice %42 {offsets = [0, 32], sizes = [10, 32], strides = [1, 1]} : vector<10x96xf32> to vector<10x32xf32>
    %47 = vector.extract_strided_slice %42 {offsets = [0, 64], sizes = [10, 32], strides = [1, 1]} : vector<10x96xf32> to vector<10x32xf32>
    %48 = vector.extract_strided_slice %45 {offsets = [0, 0], sizes = [10, 8], strides = [1, 1]} : vector<10x32xf32> to vector<10x8xf32>
    %49 = vector.extract_strided_slice %46 {offsets = [0, 0], sizes = [10, 8], strides = [1, 1]} : vector<10x32xf32> to vector<10x8xf32>
    %cst_20 = arith.constant dense<0.000000e+00> : vector<10x10xf32>
    %50 = tpu.matmul %48, %49, %cst_20 {dimension_numbers = #tpu.dot_dimension_numbers<[1], [1], [0], [0], [0, 0, 1, 0], [], []>} : vector<10x8xf32>, vector<10x8xf32>, vector<10x10xf32> -> vector<10x10xf32>
    %51 = arith.addf %50, %5 : vector<10x10xf32>
    %cst_21 = arith.constant dense<0xFF800000> : vector<10xf32>
    %52 = vector.multi_reduction <maximumf>, %51, %cst_21 [1] : vector<10x10xf32> to vector<10xf32>
    %53 = vector.shape_cast %52 : vector<10xf32> to vector<10x1xf32>
    %54 = vector.broadcast %53 : vector<10x1xf32> to vector<10x10xf32>
    %55 = arith.subf %51, %54 : vector<10x10xf32>
    %56 = math.exp %55 : vector<10x10xf32>
    %cst_22 = arith.constant dense<0.000000e+00> : vector<10xf32>
    %57 = vector.multi_reduction <add>, %56, %cst_22 [1] : vector<10x10xf32> to vector<10xf32>
    %58 = vector.shape_cast %57 : vector<10xf32> to vector<10x1xf32>
    %59 = vector.broadcast %58 : vector<10x1xf32> to vector<10x10xf32>
    %60 = arith.divf %56, %59 : vector<10x10xf32>
    %61 = vector.extract_strided_slice %47 {offsets = [0, 0], sizes = [10, 8], strides = [1, 1]} : vector<10x32xf32> to vector<10x8xf32>
    %cst_23 = arith.constant dense<0.000000e+00> : vector<10x8xf32>
    %62 = tpu.matmul %60, %61, %cst_23 {dimension_numbers = #tpu.dot_dimension_numbers<[1], [0], [0], [1], [0, 0, 1, 1], [], []>} : vector<10x10xf32>, vector<10x8xf32>, vector<10x8xf32> -> vector<10x8xf32>
    %63 = vector.extract_strided_slice %45 {offsets = [0, 8], sizes = [10, 8], strides = [1, 1]} : vector<10x32xf32> to vector<10x8xf32>
    %64 = vector.extract_strided_slice %46 {offsets = [0, 8], sizes = [10, 8], strides = [1, 1]} : vector<10x32xf32> to vector<10x8xf32>
    %cst_24 = arith.constant dense<0.000000e+00> : vector<10x10xf32>
    %65 = tpu.matmul %63, %64, %cst_24 {dimension_numbers = #tpu.dot_dimension_numbers<[1], [1], [0], [0], [0, 0, 1, 0], [], []>} : vector<10x8xf32>, vector<10x8xf32>, vector<10x10xf32> -> vector<10x10xf32>
    %66 = arith.addf %65, %5 : vector<10x10xf32>
    %cst_25 = arith.constant dense<0xFF800000> : vector<10xf32>
    %67 = vector.multi_reduction <maximumf>, %66, %cst_25 [1] : vector<10x10xf32> to vector<10xf32>
    %68 = vector.shape_cast %67 : vector<10xf32> to vector<10x1xf32>
    %69 = vector.broadcast %68 : vector<10x1xf32> to vector<10x10xf32>
    %70 = arith.subf %66, %69 : vector<10x10xf32>
    %71 = math.exp %70 : vector<10x10xf32>
    %cst_26 = arith.constant dense<0.000000e+00> : vector<10xf32>
    %72 = vector.multi_reduction <add>, %71, %cst_26 [1] : vector<10x10xf32> to vector<10xf32>
    %73 = vector.shape_cast %72 : vector<10xf32> to vector<10x1xf32>
    %74 = vector.broadcast %73 : vector<10x1xf32> to vector<10x10xf32>
    %75 = arith.divf %71, %74 : vector<10x10xf32>
    %76 = vector.extract_strided_slice %47 {offsets = [0, 8], sizes = [10, 8], strides = [1, 1]} : vector<10x32xf32> to vector<10x8xf32>
    %cst_27 = arith.constant dense<0.000000e+00> : vector<10x8xf32>
    %77 = tpu.matmul %75, %76, %cst_27 {dimension_numbers = #tpu.dot_dimension_numbers<[1], [0], [0], [1], [0, 0, 1, 1], [], []>} : vector<10x10xf32>, vector<10x8xf32>, vector<10x8xf32> -> vector<10x8xf32>
    %78 = vector.extract_strided_slice %45 {offsets = [0, 16], sizes = [10, 8], strides = [1, 1]} : vector<10x32xf32> to vector<10x8xf32>
    %79 = vector.extract_strided_slice %46 {offsets = [0, 16], sizes = [10, 8], strides = [1, 1]} : vector<10x32xf32> to vector<10x8xf32>
    %cst_28 = arith.constant dense<0.000000e+00> : vector<10x10xf32>
    %80 = tpu.matmul %78, %79, %cst_28 {dimension_numbers = #tpu.dot_dimension_numbers<[1], [1], [0], [0], [0, 0, 1, 0], [], []>} : vector<10x8xf32>, vector<10x8xf32>, vector<10x10xf32> -> vector<10x10xf32>
    %81 = arith.addf %80, %5 : vector<10x10xf32>
    %cst_29 = arith.constant dense<0xFF800000> : vector<10xf32>
    %82 = vector.multi_reduction <maximumf>, %81, %cst_29 [1] : vector<10x10xf32> to vector<10xf32>
    %83 = vector.shape_cast %82 : vector<10xf32> to vector<10x1xf32>
    %84 = vector.broadcast %83 : vector<10x1xf32> to vector<10x10xf32>
    %85 = arith.subf %81, %84 : vector<10x10xf32>
    %86 = math.exp %85 : vector<10x10xf32>
    %cst_30 = arith.constant dense<0.000000e+00> : vector<10xf32>
    %87 = vector.multi_reduction <add>, %86, %cst_30 [1] : vector<10x10xf32> to vector<10xf32>
    %88 = vector.shape_cast %87 : vector<10xf32> to vector<10x1xf32>
    %89 = vector.broadcast %88 : vector<10x1xf32> to vector<10x10xf32>
    %90 = arith.divf %86, %89 : vector<10x10xf32>
    %91 = vector.extract_strided_slice %47 {offsets = [0, 16], sizes = [10, 8], strides = [1, 1]} : vector<10x32xf32> to vector<10x8xf32>
    %cst_31 = arith.constant dense<0.000000e+00> : vector<10x8xf32>
    %92 = tpu.matmul %90, %91, %cst_31 {dimension_numbers = #tpu.dot_dimension_numbers<[1], [0], [0], [1], [0, 0, 1, 1], [], []>} : vector<10x10xf32>, vector<10x8xf32>, vector<10x8xf32> -> vector<10x8xf32>
    %93 = vector.extract_strided_slice %45 {offsets = [0, 24], sizes = [10, 8], strides = [1, 1]} : vector<10x32xf32> to vector<10x8xf32>
    %94 = vector.extract_strided_slice %46 {offsets = [0, 24], sizes = [10, 8], strides = [1, 1]} : vector<10x32xf32> to vector<10x8xf32>
    %cst_32 = arith.constant dense<0.000000e+00> : vector<10x10xf32>
    %95 = tpu.matmul %93, %94, %cst_32 {dimension_numbers = #tpu.dot_dimension_numbers<[1], [1], [0], [0], [0, 0, 1, 0], [], []>} : vector<10x8xf32>, vector<10x8xf32>, vector<10x10xf32> -> vector<10x10xf32>
    %96 = arith.addf %95, %5 : vector<10x10xf32>
    %cst_33 = arith.constant dense<0xFF800000> : vector<10xf32>
    %97 = vector.multi_reduction <maximumf>, %96, %cst_33 [1] : vector<10x10xf32> to vector<10xf32>
    %98 = vector.shape_cast %97 : vector<10xf32> to vector<10x1xf32>
    %99 = vector.broadcast %98 : vector<10x1xf32> to vector<10x10xf32>
    %100 = arith.subf %96, %99 : vector<10x10xf32>
    %101 = math.exp %100 : vector<10x10xf32>
    %cst_34 = arith.constant dense<0.000000e+00> : vector<10xf32>
    %102 = vector.multi_reduction <add>, %101, %cst_34 [1] : vector<10x10xf32> to vector<10xf32>
    %103 = vector.shape_cast %102 : vector<10xf32> to vector<10x1xf32>
    %104 = vector.broadcast %103 : vector<10x1xf32> to vector<10x10xf32>
    %105 = arith.divf %101, %104 : vector<10x10xf32>
    %106 = vector.extract_strided_slice %47 {offsets = [0, 24], sizes = [10, 8], strides = [1, 1]} : vector<10x32xf32> to vector<10x8xf32>
    %cst_35 = arith.constant dense<0.000000e+00> : vector<10x8xf32>
    %107 = tpu.matmul %105, %106, %cst_35 {dimension_numbers = #tpu.dot_dimension_numbers<[1], [0], [0], [1], [0, 0, 1, 1], [], []>} : vector<10x10xf32>, vector<10x8xf32>, vector<10x8xf32> -> vector<10x8xf32>
    %108 = tpu.concatenate %62, %77, %92, %107 in 1 : vector<10x8xf32>, vector<10x8xf32>, vector<10x8xf32>, vector<10x8xf32> -> vector<10x32xf32>
    %c0_36 = arith.constant 0 : index
    %c0_37 = arith.constant 0 : index
    %c0_38 = arith.constant 0 : index
    %109 = vector.load %arg6[%c0_36, %c0_37, %c0_38] : memref<2x32x32xf32, #tpu.memory_space<vmem>>, vector<1x32x32xf32>
    %110 = vector.shape_cast %109 : vector<1x32x32xf32> to vector<32x32xf32>
    %cst_39 = arith.constant dense<0.000000e+00> : vector<10x32xf32>
    %111 = tpu.matmul %108, %110, %cst_39 {dimension_numbers = #tpu.dot_dimension_numbers<[1], [0], [0], [1], [0, 0, 1, 1], [], []>} : vector<10x32xf32>, vector<32x32xf32>, vector<10x32xf32> -> vector<10x32xf32>
    %112 = arith.addf %4, %111 : vector<10x32xf32>
    %113 = vector.broadcast %11 : vector<1x32xf32> to vector<10x32xf32>
    %114 = arith.addf %112, %113 : vector<10x32xf32>
    %cst_40 = arith.constant dense<0.000000e+00> : vector<10xf32>
    %115 = vector.multi_reduction <add>, %114, %cst_40 [1] : vector<10x32xf32> to vector<10xf32>
    %116 = vector.shape_cast %115 : vector<10xf32> to vector<10x1xf32>
    %cst_41 = arith.constant 3.200000e+01 : f32
    %117 = vector.broadcast %cst_41 : f32 to vector<10x1xf32>
    %118 = arith.divf %116, %117 : vector<10x1xf32>
    %119 = vector.broadcast %118 : vector<10x1xf32> to vector<10x32xf32>
    %120 = arith.subf %114, %119 : vector<10x32xf32>
    %121 = arith.mulf %120, %120 : vector<10x32xf32>
    %cst_42 = arith.constant dense<0.000000e+00> : vector<10xf32>
    %122 = vector.multi_reduction <add>, %121, %cst_42 [1] : vector<10x32xf32> to vector<10xf32>
    %123 = vector.shape_cast %122 : vector<10xf32> to vector<10x1xf32>
    %cst_43 = arith.constant 3.200000e+01 : f32
    %124 = vector.broadcast %cst_43 : f32 to vector<10x1xf32>
    %125 = arith.divf %123, %124 : vector<10x1xf32>
    %126 = vector.broadcast %118 : vector<10x1xf32> to vector<10x32xf32>
    %127 = arith.subf %114, %126 : vector<10x32xf32>
    %cst_44 = arith.constant 9.99999997E-7 : f32
    %128 = vector.broadcast %cst_44 : f32 to vector<10x1xf32>
    %129 = arith.addf %125, %128 : vector<10x1xf32>
    %130 = math.rsqrt %129 : vector<10x1xf32>
    %131 = vector.broadcast %130 : vector<10x1xf32> to vector<10x32xf32>
    %132 = arith.mulf %127, %131 : vector<10x32xf32>
    %133 = vector.broadcast %12 : vector<1x32xf32> to vector<10x32xf32>
    %134 = arith.mulf %132, %133 : vector<10x32xf32>
    %135 = vector.broadcast %13 : vector<1x32xf32> to vector<10x32xf32>
    %136 = arith.addf %134, %135 : vector<10x32xf32>
    %c0_45 = arith.constant 0 : index
    %c0_46 = arith.constant 0 : index
    %c0_47 = arith.constant 0 : index
    %137 = vector.load %arg7[%c0_45, %c0_46, %c0_47] : memref<2x32x64xf32, #tpu.memory_space<vmem>>, vector<1x32x64xf32>
    %138 = vector.shape_cast %137 : vector<1x32x64xf32> to vector<32x64xf32>
    %cst_48 = arith.constant dense<0.000000e+00> : vector<10x64xf32>
    %139 = tpu.matmul %136, %138, %cst_48 {dimension_numbers = #tpu.dot_dimension_numbers<[1], [0], [0], [1], [0, 0, 1, 1], [], []>} : vector<10x32xf32>, vector<32x64xf32>, vector<10x64xf32> -> vector<10x64xf32>
    %140 = vector.broadcast %14 : vector<1x64xf32> to vector<10x64xf32>
    %141 = arith.addf %139, %140 : vector<10x64xf32>
    %142 = arith.mulf %141, %141 : vector<10x64xf32>
    %143 = arith.mulf %141, %142 : vector<10x64xf32>
    %cst_49 = arith.constant 4.471500e-02 : f32
    %144 = vector.broadcast %cst_49 : f32 to vector<10x64xf32>
    %145 = arith.mulf %144, %143 : vector<10x64xf32>
    %146 = arith.addf %141, %145 : vector<10x64xf32>
    %cst_50 = arith.constant 0.797884583 : f32
    %147 = vector.broadcast %cst_50 : f32 to vector<10x64xf32>
    %148 = arith.mulf %147, %146 : vector<10x64xf32>
    %149 = math.tanh %148 : vector<10x64xf32>
    %cst_51 = arith.constant 1.000000e+00 : f32
    %150 = vector.broadcast %cst_51 : f32 to vector<10x64xf32>
    %151 = arith.addf %150, %149 : vector<10x64xf32>
    %cst_52 = arith.constant 5.000000e-01 : f32
    %152 = vector.broadcast %cst_52 : f32 to vector<10x64xf32>
    %153 = arith.mulf %152, %151 : vector<10x64xf32>
    %154 = arith.mulf %141, %153 : vector<10x64xf32>
    %c0_53 = arith.constant 0 : index
    %c0_54 = arith.constant 0 : index
    %c0_55 = arith.constant 0 : index
    %155 = vector.load %arg8[%c0_53, %c0_54, %c0_55] : memref<2x64x32xf32, #tpu.memory_space<vmem>>, vector<1x64x32xf32>
    %156 = vector.shape_cast %155 : vector<1x64x32xf32> to vector<64x32xf32>
    %cst_56 = arith.constant dense<0.000000e+00> : vector<10x32xf32>
    %157 = tpu.matmul %154, %156, %cst_56 {dimension_numbers = #tpu.dot_dimension_numbers<[1], [0], [0], [1], [0, 0, 1, 1], [], []>} : vector<10x64xf32>, vector<64x32xf32>, vector<10x32xf32> -> vector<10x32xf32>
    %158 = arith.addf %114, %157 : vector<10x32xf32>
    %159 = vector.broadcast %15 : vector<1x32xf32> to vector<10x32xf32>
    %160 = arith.addf %158, %159 : vector<10x32xf32>
    %c1 = arith.constant 1 : index
    %c0_57 = arith.constant 0 : index
    %c0_58 = arith.constant 0 : index
    %161 = vector.load %arg9[%c1, %c0_57, %c0_58] : memref<2x8x128xf32, #tpu.memory_space<vmem>>, vector<1x8x128xf32>
    %162 = vector.shape_cast %161 : vector<1x8x128xf32> to vector<8x128xf32>
    %163 = vector.extract_strided_slice %162 {offsets = [0, 0], sizes = [1, 32], strides = [1, 1]} : vector<8x128xf32> to vector<1x32xf32>
    %164 = vector.extract_strided_slice %162 {offsets = [1, 0], sizes = [1, 32], strides = [1, 1]} : vector<8x128xf32> to vector<1x32xf32>
    %165 = vector.extract_strided_slice %162 {offsets = [2, 0], sizes = [1, 96], strides = [1, 1]} : vector<8x128xf32> to vector<1x96xf32>
    %166 = vector.extract_strided_slice %162 {offsets = [3, 0], sizes = [1, 32], strides = [1, 1]} : vector<8x128xf32> to vector<1x32xf32>
    %167 = vector.extract_strided_slice %162 {offsets = [4, 0], sizes = [1, 32], strides = [1, 1]} : vector<8x128xf32> to vector<1x32xf32>
    %168 = vector.extract_strided_slice %162 {offsets = [5, 0], sizes = [1, 32], strides = [1, 1]} : vector<8x128xf32> to vector<1x32xf32>
    %169 = vector.extract_strided_slice %162 {offsets = [6, 0], sizes = [1, 64], strides = [1, 1]} : vector<8x128xf32> to vector<1x64xf32>
    %170 = vector.extract_strided_slice %162 {offsets = [7, 0], sizes = [1, 32], strides = [1, 1]} : vector<8x128xf32> to vector<1x32xf32>
    %cst_59 = arith.constant dense<0.000000e+00> : vector<10xf32>
    %171 = vector.multi_reduction <add>, %160, %cst_59 [1] : vector<10x32xf32> to vector<10xf32>
    %172 = vector.shape_cast %171 : vector<10xf32> to vector<10x1xf32>
    %cst_60 = arith.constant 3.200000e+01 : f32
    %173 = vector.broadcast %cst_60 : f32 to vector<10x1xf32>
    %174 = arith.divf %172, %173 : vector<10x1xf32>
    %175 = vector.broadcast %174 : vector<10x1xf32> to vector<10x32xf32>
    %176 = arith.subf %160, %175 : vector<10x32xf32>
    %177 = arith.mulf %176, %176 : vector<10x32xf32>
    %cst_61 = arith.constant dense<0.000000e+00> : vector<10xf32>
    %178 = vector.multi_reduction <add>, %177, %cst_61 [1] : vector<10x32xf32> to vector<10xf32>
    %179 = vector.shape_cast %178 : vector<10xf32> to vector<10x1xf32>
    %cst_62 = arith.constant 3.200000e+01 : f32
    %180 = vector.broadcast %cst_62 : f32 to vector<10x1xf32>
    %181 = arith.divf %179, %180 : vector<10x1xf32>
    %182 = vector.broadcast %174 : vector<10x1xf32> to vector<10x32xf32>
    %183 = arith.subf %160, %182 : vector<10x32xf32>
    %cst_63 = arith.constant 9.99999997E-7 : f32
    %184 = vector.broadcast %cst_63 : f32 to vector<10x1xf32>
    %185 = arith.addf %181, %184 : vector<10x1xf32>
    %186 = math.rsqrt %185 : vector<10x1xf32>
    %187 = vector.broadcast %186 : vector<10x1xf32> to vector<10x32xf32>
    %188 = arith.mulf %183, %187 : vector<10x32xf32>
    %189 = vector.broadcast %163 : vector<1x32xf32> to vector<10x32xf32>
    %190 = arith.mulf %188, %189 : vector<10x32xf32>
    %191 = vector.broadcast %164 : vector<1x32xf32> to vector<10x32xf32>
    %192 = arith.addf %190, %191 : vector<10x32xf32>
    %c1_64 = arith.constant 1 : index
    %c0_65 = arith.constant 0 : index
    %c0_66 = arith.constant 0 : index
    %193 = vector.load %arg5[%c1_64, %c0_65, %c0_66] : memref<2x32x96xf32, #tpu.memory_space<vmem>>, vector<1x32x96xf32>
    %194 = vector.shape_cast %193 : vector<1x32x96xf32> to vector<32x96xf32>
    %cst_67 = arith.constant dense<0.000000e+00> : vector<10x96xf32>
    %195 = tpu.matmul %192, %194, %cst_67 {dimension_numbers = #tpu.dot_dimension_numbers<[1], [0], [0], [1], [0, 0, 1, 1], [], []>} : vector<10x32xf32>, vector<32x96xf32>, vector<10x96xf32> -> vector<10x96xf32>
    %196 = vector.broadcast %165 : vector<1x96xf32> to vector<10x96xf32>
    %197 = arith.addf %195, %196 : vector<10x96xf32>
    %198 = vector.extract_strided_slice %197 {offsets = [0, 0], sizes = [10, 32], strides = [1, 1]} : vector<10x96xf32> to vector<10x32xf32>
    %cst_68 = arith.constant 0.353553385 : f32
    %199 = vector.broadcast %cst_68 : f32 to vector<10x32xf32>
    %200 = arith.mulf %198, %199 : vector<10x32xf32>
    %201 = vector.extract_strided_slice %197 {offsets = [0, 32], sizes = [10, 32], strides = [1, 1]} : vector<10x96xf32> to vector<10x32xf32>
    %202 = vector.extract_strided_slice %197 {offsets = [0, 64], sizes = [10, 32], strides = [1, 1]} : vector<10x96xf32> to vector<10x32xf32>
    %203 = vector.extract_strided_slice %200 {offsets = [0, 0], sizes = [10, 8], strides = [1, 1]} : vector<10x32xf32> to vector<10x8xf32>
    %204 = vector.extract_strided_slice %201 {offsets = [0, 0], sizes = [10, 8], strides = [1, 1]} : vector<10x32xf32> to vector<10x8xf32>
    %cst_69 = arith.constant dense<0.000000e+00> : vector<10x10xf32>
    %205 = tpu.matmul %203, %204, %cst_69 {dimension_numbers = #tpu.dot_dimension_numbers<[1], [1], [0], [0], [0, 0, 1, 0], [], []>} : vector<10x8xf32>, vector<10x8xf32>, vector<10x10xf32> -> vector<10x10xf32>
    %206 = arith.addf %205, %5 : vector<10x10xf32>
    %cst_70 = arith.constant dense<0xFF800000> : vector<10xf32>
    %207 = vector.multi_reduction <maximumf>, %206, %cst_70 [1] : vector<10x10xf32> to vector<10xf32>
    %208 = vector.shape_cast %207 : vector<10xf32> to vector<10x1xf32>
    %209 = vector.broadcast %208 : vector<10x1xf32> to vector<10x10xf32>
    %210 = arith.subf %206, %209 : vector<10x10xf32>
    %211 = math.exp %210 : vector<10x10xf32>
    %cst_71 = arith.constant dense<0.000000e+00> : vector<10xf32>
    %212 = vector.multi_reduction <add>, %211, %cst_71 [1] : vector<10x10xf32> to vector<10xf32>
    %213 = vector.shape_cast %212 : vector<10xf32> to vector<10x1xf32>
    %214 = vector.broadcast %213 : vector<10x1xf32> to vector<10x10xf32>
    %215 = arith.divf %211, %214 : vector<10x10xf32>
    %216 = vector.extract_strided_slice %202 {offsets = [0, 0], sizes = [10, 8], strides = [1, 1]} : vector<10x32xf32> to vector<10x8xf32>
    %cst_72 = arith.constant dense<0.000000e+00> : vector<10x8xf32>
    %217 = tpu.matmul %215, %216, %cst_72 {dimension_numbers = #tpu.dot_dimension_numbers<[1], [0], [0], [1], [0, 0, 1, 1], [], []>} : vector<10x10xf32>, vector<10x8xf32>, vector<10x8xf32> -> vector<10x8xf32>
    %218 = vector.extract_strided_slice %200 {offsets = [0, 8], sizes = [10, 8], strides = [1, 1]} : vector<10x32xf32> to vector<10x8xf32>
    %219 = vector.extract_strided_slice %201 {offsets = [0, 8], sizes = [10, 8], strides = [1, 1]} : vector<10x32xf32> to vector<10x8xf32>
    %cst_73 = arith.constant dense<0.000000e+00> : vector<10x10xf32>
    %220 = tpu.matmul %218, %219, %cst_73 {dimension_numbers = #tpu.dot_dimension_numbers<[1], [1], [0], [0], [0, 0, 1, 0], [], []>} : vector<10x8xf32>, vector<10x8xf32>, vector<10x10xf32> -> vector<10x10xf32>
    %221 = arith.addf %220, %5 : vector<10x10xf32>
    %cst_74 = arith.constant dense<0xFF800000> : vector<10xf32>
    %222 = vector.multi_reduction <maximumf>, %221, %cst_74 [1] : vector<10x10xf32> to vector<10xf32>
    %223 = vector.shape_cast %222 : vector<10xf32> to vector<10x1xf32>
    %224 = vector.broadcast %223 : vector<10x1xf32> to vector<10x10xf32>
    %225 = arith.subf %221, %224 : vector<10x10xf32>
    %226 = math.exp %225 : vector<10x10xf32>
    %cst_75 = arith.constant dense<0.000000e+00> : vector<10xf32>
    %227 = vector.multi_reduction <add>, %226, %cst_75 [1] : vector<10x10xf32> to vector<10xf32>
    %228 = vector.shape_cast %227 : vector<10xf32> to vector<10x1xf32>
    %229 = vector.broadcast %228 : vector<10x1xf32> to vector<10x10xf32>
    %230 = arith.divf %226, %229 : vector<10x10xf32>
    %231 = vector.extract_strided_slice %202 {offsets = [0, 8], sizes = [10, 8], strides = [1, 1]} : vector<10x32xf32> to vector<10x8xf32>
    %cst_76 = arith.constant dense<0.000000e+00> : vector<10x8xf32>
    %232 = tpu.matmul %230, %231, %cst_76 {dimension_numbers = #tpu.dot_dimension_numbers<[1], [0], [0], [1], [0, 0, 1, 1], [], []>} : vector<10x10xf32>, vector<10x8xf32>, vector<10x8xf32> -> vector<10x8xf32>
    %233 = vector.extract_strided_slice %200 {offsets = [0, 16], sizes = [10, 8], strides = [1, 1]} : vector<10x32xf32> to vector<10x8xf32>
    %234 = vector.extract_strided_slice %201 {offsets = [0, 16], sizes = [10, 8], strides = [1, 1]} : vector<10x32xf32> to vector<10x8xf32>
    %cst_77 = arith.constant dense<0.000000e+00> : vector<10x10xf32>
    %235 = tpu.matmul %233, %234, %cst_77 {dimension_numbers = #tpu.dot_dimension_numbers<[1], [1], [0], [0], [0, 0, 1, 0], [], []>} : vector<10x8xf32>, vector<10x8xf32>, vector<10x10xf32> -> vector<10x10xf32>
    %236 = arith.addf %235, %5 : vector<10x10xf32>
    %cst_78 = arith.constant dense<0xFF800000> : vector<10xf32>
    %237 = vector.multi_reduction <maximumf>, %236, %cst_78 [1] : vector<10x10xf32> to vector<10xf32>
    %238 = vector.shape_cast %237 : vector<10xf32> to vector<10x1xf32>
    %239 = vector.broadcast %238 : vector<10x1xf32> to vector<10x10xf32>
    %240 = arith.subf %236, %239 : vector<10x10xf32>
    %241 = math.exp %240 : vector<10x10xf32>
    %cst_79 = arith.constant dense<0.000000e+00> : vector<10xf32>
    %242 = vector.multi_reduction <add>, %241, %cst_79 [1] : vector<10x10xf32> to vector<10xf32>
    %243 = vector.shape_cast %242 : vector<10xf32> to vector<10x1xf32>
    %244 = vector.broadcast %243 : vector<10x1xf32> to vector<10x10xf32>
    %245 = arith.divf %241, %244 : vector<10x10xf32>
    %246 = vector.extract_strided_slice %202 {offsets = [0, 16], sizes = [10, 8], strides = [1, 1]} : vector<10x32xf32> to vector<10x8xf32>
    %cst_80 = arith.constant dense<0.000000e+00> : vector<10x8xf32>
    %247 = tpu.matmul %245, %246, %cst_80 {dimension_numbers = #tpu.dot_dimension_numbers<[1], [0], [0], [1], [0, 0, 1, 1], [], []>} : vector<10x10xf32>, vector<10x8xf32>, vector<10x8xf32> -> vector<10x8xf32>
    %248 = vector.extract_strided_slice %200 {offsets = [0, 24], sizes = [10, 8], strides = [1, 1]} : vector<10x32xf32> to vector<10x8xf32>
    %249 = vector.extract_strided_slice %201 {offsets = [0, 24], sizes = [10, 8], strides = [1, 1]} : vector<10x32xf32> to vector<10x8xf32>
    %cst_81 = arith.constant dense<0.000000e+00> : vector<10x10xf32>
    %250 = tpu.matmul %248, %249, %cst_81 {dimension_numbers = #tpu.dot_dimension_numbers<[1], [1], [0], [0], [0, 0, 1, 0], [], []>} : vector<10x8xf32>, vector<10x8xf32>, vector<10x10xf32> -> vector<10x10xf32>
    %251 = arith.addf %250, %5 : vector<10x10xf32>
    %cst_82 = arith.constant dense<0xFF800000> : vector<10xf32>
    %252 = vector.multi_reduction <maximumf>, %251, %cst_82 [1] : vector<10x10xf32> to vector<10xf32>
    %253 = vector.shape_cast %252 : vector<10xf32> to vector<10x1xf32>
    %254 = vector.broadcast %253 : vector<10x1xf32> to vector<10x10xf32>
    %255 = arith.subf %251, %254 : vector<10x10xf32>
    %256 = math.exp %255 : vector<10x10xf32>
    %cst_83 = arith.constant dense<0.000000e+00> : vector<10xf32>
    %257 = vector.multi_reduction <add>, %256, %cst_83 [1] : vector<10x10xf32> to vector<10xf32>
    %258 = vector.shape_cast %257 : vector<10xf32> to vector<10x1xf32>
    %259 = vector.broadcast %258 : vector<10x1xf32> to vector<10x10xf32>
    %260 = arith.divf %256, %259 : vector<10x10xf32>
    %261 = vector.extract_strided_slice %202 {offsets = [0, 24], sizes = [10, 8], strides = [1, 1]} : vector<10x32xf32> to vector<10x8xf32>
    %cst_84 = arith.constant dense<0.000000e+00> : vector<10x8xf32>
    %262 = tpu.matmul %260, %261, %cst_84 {dimension_numbers = #tpu.dot_dimension_numbers<[1], [0], [0], [1], [0, 0, 1, 1], [], []>} : vector<10x10xf32>, vector<10x8xf32>, vector<10x8xf32> -> vector<10x8xf32>
    %263 = tpu.concatenate %217, %232, %247, %262 in 1 : vector<10x8xf32>, vector<10x8xf32>, vector<10x8xf32>, vector<10x8xf32> -> vector<10x32xf32>
    %c1_85 = arith.constant 1 : index
    %c0_86 = arith.constant 0 : index
    %c0_87 = arith.constant 0 : index
    %264 = vector.load %arg6[%c1_85, %c0_86, %c0_87] : memref<2x32x32xf32, #tpu.memory_space<vmem>>, vector<1x32x32xf32>
    %265 = vector.shape_cast %264 : vector<1x32x32xf32> to vector<32x32xf32>
    %cst_88 = arith.constant dense<0.000000e+00> : vector<10x32xf32>
    %266 = tpu.matmul %263, %265, %cst_88 {dimension_numbers = #tpu.dot_dimension_numbers<[1], [0], [0], [1], [0, 0, 1, 1], [], []>} : vector<10x32xf32>, vector<32x32xf32>, vector<10x32xf32> -> vector<10x32xf32>
    %267 = arith.addf %160, %266 : vector<10x32xf32>
    %268 = vector.broadcast %166 : vector<1x32xf32> to vector<10x32xf32>
    %269 = arith.addf %267, %268 : vector<10x32xf32>
    %cst_89 = arith.constant dense<0.000000e+00> : vector<10xf32>
    %270 = vector.multi_reduction <add>, %269, %cst_89 [1] : vector<10x32xf32> to vector<10xf32>
    %271 = vector.shape_cast %270 : vector<10xf32> to vector<10x1xf32>
    %cst_90 = arith.constant 3.200000e+01 : f32
    %272 = vector.broadcast %cst_90 : f32 to vector<10x1xf32>
    %273 = arith.divf %271, %272 : vector<10x1xf32>
    %274 = vector.broadcast %273 : vector<10x1xf32> to vector<10x32xf32>
    %275 = arith.subf %269, %274 : vector<10x32xf32>
    %276 = arith.mulf %275, %275 : vector<10x32xf32>
    %cst_91 = arith.constant dense<0.000000e+00> : vector<10xf32>
    %277 = vector.multi_reduction <add>, %276, %cst_91 [1] : vector<10x32xf32> to vector<10xf32>
    %278 = vector.shape_cast %277 : vector<10xf32> to vector<10x1xf32>
    %cst_92 = arith.constant 3.200000e+01 : f32
    %279 = vector.broadcast %cst_92 : f32 to vector<10x1xf32>
    %280 = arith.divf %278, %279 : vector<10x1xf32>
    %281 = vector.broadcast %273 : vector<10x1xf32> to vector<10x32xf32>
    %282 = arith.subf %269, %281 : vector<10x32xf32>
    %cst_93 = arith.constant 9.99999997E-7 : f32
    %283 = vector.broadcast %cst_93 : f32 to vector<10x1xf32>
    %284 = arith.addf %280, %283 : vector<10x1xf32>
    %285 = math.rsqrt %284 : vector<10x1xf32>
    %286 = vector.broadcast %285 : vector<10x1xf32> to vector<10x32xf32>
    %287 = arith.mulf %282, %286 : vector<10x32xf32>
    %288 = vector.broadcast %167 : vector<1x32xf32> to vector<10x32xf32>
    %289 = arith.mulf %287, %288 : vector<10x32xf32>
    %290 = vector.broadcast %168 : vector<1x32xf32> to vector<10x32xf32>
    %291 = arith.addf %289, %290 : vector<10x32xf32>
    %c1_94 = arith.constant 1 : index
    %c0_95 = arith.constant 0 : index
    %c0_96 = arith.constant 0 : index
    %292 = vector.load %arg7[%c1_94, %c0_95, %c0_96] : memref<2x32x64xf32, #tpu.memory_space<vmem>>, vector<1x32x64xf32>
    %293 = vector.shape_cast %292 : vector<1x32x64xf32> to vector<32x64xf32>
    %cst_97 = arith.constant dense<0.000000e+00> : vector<10x64xf32>
    %294 = tpu.matmul %291, %293, %cst_97 {dimension_numbers = #tpu.dot_dimension_numbers<[1], [0], [0], [1], [0, 0, 1, 1], [], []>} : vector<10x32xf32>, vector<32x64xf32>, vector<10x64xf32> -> vector<10x64xf32>
    %295 = vector.broadcast %169 : vector<1x64xf32> to vector<10x64xf32>
    %296 = arith.addf %294, %295 : vector<10x64xf32>
    %297 = arith.mulf %296, %296 : vector<10x64xf32>
    %298 = arith.mulf %296, %297 : vector<10x64xf32>
    %cst_98 = arith.constant 4.471500e-02 : f32
    %299 = vector.broadcast %cst_98 : f32 to vector<10x64xf32>
    %300 = arith.mulf %299, %298 : vector<10x64xf32>
    %301 = arith.addf %296, %300 : vector<10x64xf32>
    %cst_99 = arith.constant 0.797884583 : f32
    %302 = vector.broadcast %cst_99 : f32 to vector<10x64xf32>
    %303 = arith.mulf %302, %301 : vector<10x64xf32>
    %304 = math.tanh %303 : vector<10x64xf32>
    %cst_100 = arith.constant 1.000000e+00 : f32
    %305 = vector.broadcast %cst_100 : f32 to vector<10x64xf32>
    %306 = arith.addf %305, %304 : vector<10x64xf32>
    %cst_101 = arith.constant 5.000000e-01 : f32
    %307 = vector.broadcast %cst_101 : f32 to vector<10x64xf32>
    %308 = arith.mulf %307, %306 : vector<10x64xf32>
    %309 = arith.mulf %296, %308 : vector<10x64xf32>
    %c1_102 = arith.constant 1 : index
    %c0_103 = arith.constant 0 : index
    %c0_104 = arith.constant 0 : index
    %310 = vector.load %arg8[%c1_102, %c0_103, %c0_104] : memref<2x64x32xf32, #tpu.memory_space<vmem>>, vector<1x64x32xf32>
    %311 = vector.shape_cast %310 : vector<1x64x32xf32> to vector<64x32xf32>
    %cst_105 = arith.constant dense<0.000000e+00> : vector<10x32xf32>
    %312 = tpu.matmul %309, %311, %cst_105 {dimension_numbers = #tpu.dot_dimension_numbers<[1], [0], [0], [1], [0, 0, 1, 1], [], []>} : vector<10x64xf32>, vector<64x32xf32>, vector<10x32xf32> -> vector<10x32xf32>
    %313 = arith.addf %269, %312 : vector<10x32xf32>
    %314 = vector.broadcast %170 : vector<1x32xf32> to vector<10x32xf32>
    %315 = arith.addf %313, %314 : vector<10x32xf32>
    %c0_106 = arith.constant 0 : index
    %c0_107 = arith.constant 0 : index
    %316 = vector.load %arg10[%c0_106, %c0_107] : memref<2x32xf32, #tpu.memory_space<vmem>>, vector<1x32xf32>
    %c1_108 = arith.constant 1 : index
    %c0_109 = arith.constant 0 : index
    %317 = vector.load %arg10[%c1_108, %c0_109] : memref<2x32xf32, #tpu.memory_space<vmem>>, vector<1x32xf32>
    %cst_110 = arith.constant dense<0.000000e+00> : vector<10xf32>
    %318 = vector.multi_reduction <add>, %315, %cst_110 [1] : vector<10x32xf32> to vector<10xf32>
    %319 = vector.shape_cast %318 : vector<10xf32> to vector<10x1xf32>
    %cst_111 = arith.constant 3.200000e+01 : f32
    %320 = vector.broadcast %cst_111 : f32 to vector<10x1xf32>
    %321 = arith.divf %319, %320 : vector<10x1xf32>
    %322 = vector.broadcast %321 : vector<10x1xf32> to vector<10x32xf32>
    %323 = arith.subf %315, %322 : vector<10x32xf32>
    %324 = arith.mulf %323, %323 : vector<10x32xf32>
    %cst_112 = arith.constant dense<0.000000e+00> : vector<10xf32>
    %325 = vector.multi_reduction <add>, %324, %cst_112 [1] : vector<10x32xf32> to vector<10xf32>
    %326 = vector.shape_cast %325 : vector<10xf32> to vector<10x1xf32>
    %cst_113 = arith.constant 3.200000e+01 : f32
    %327 = vector.broadcast %cst_113 : f32 to vector<10x1xf32>
    %328 = arith.divf %326, %327 : vector<10x1xf32>
    %329 = vector.broadcast %321 : vector<10x1xf32> to vector<10x32xf32>
    %330 = arith.subf %315, %329 : vector<10x32xf32>
    %cst_114 = arith.constant 9.99999997E-7 : f32
    %331 = vector.broadcast %cst_114 : f32 to vector<10x1xf32>
    %332 = arith.addf %328, %331 : vector<10x1xf32>
    %333 = math.rsqrt %332 : vector<10x1xf32>
    %334 = vector.broadcast %333 : vector<10x1xf32> to vector<10x32xf32>
    %335 = arith.mulf %330, %334 : vector<10x32xf32>
    %336 = vector.broadcast %316 : vector<1x32xf32> to vector<10x32xf32>
    %337 = arith.mulf %335, %336 : vector<10x32xf32>
    %338 = vector.broadcast %317 : vector<1x32xf32> to vector<10x32xf32>
    %339 = arith.addf %337, %338 : vector<10x32xf32>
    %c0_115 = arith.constant 0 : index
    %c0_116 = arith.constant 0 : index
    %340 = vector.load %arg13[%c0_115, %c0_116] : memref<10x32xf32, #tpu.memory_space<vmem>>, vector<10x32xf32>
    tpu.vector_store %arg13[%c0_115, %c0_116], %339 {strides = array<i32>} : memref<10x32xf32, #tpu.memory_space<vmem>>, vector<10x32xf32>,
    %341 = vector.extract_strided_slice %339 {offsets = [8, 0], sizes = [2, 32], strides = [1, 1]} : vector<10x32xf32> to vector<2x32xf32>
    %cst_117 = arith.constant dense<0.000000e+00> : vector<32xf32>
    %342 = vector.multi_reduction <add>, %341, %cst_117 [0] : vector<2x32xf32> to vector<32xf32>
    %343 = vector.shape_cast %342 : vector<32xf32> to vector<1x32xf32>
    %cst_118 = arith.constant 2.000000e+00 : f32
    %344 = vector.broadcast %cst_118 : f32 to vector<1x32xf32>
    %345 = arith.divf %343, %344 : vector<1x32xf32>
    %346 = vector.broadcast %345 : vector<1x32xf32> to vector<2x32xf32>
    %347 = arith.subf %341, %346 : vector<2x32xf32>
    %348 = arith.mulf %347, %347 : vector<2x32xf32>
    %cst_119 = arith.constant dense<0.000000e+00> : vector<32xf32>
    %349 = vector.multi_reduction <add>, %348, %cst_119 [0] : vector<2x32xf32> to vector<32xf32>
    %350 = vector.shape_cast %349 : vector<32xf32> to vector<1x32xf32>
    %cst_120 = arith.constant 2.000000e+00 : f32
    %351 = vector.broadcast %cst_120 : f32 to vector<1x32xf32>
    %352 = arith.divf %350, %351 : vector<1x32xf32>
    %353 = vector.broadcast %345 : vector<1x32xf32> to vector<2x32xf32>
    %354 = arith.subf %341, %353 : vector<2x32xf32>
    %cst_121 = arith.constant 9.99999974E-6 : f32
    %355 = vector.broadcast %cst_121 : f32 to vector<1x32xf32>
    %356 = arith.addf %352, %355 : vector<1x32xf32>
    %357 = math.rsqrt %356 : vector<1x32xf32>
    %358 = vector.broadcast %357 : vector<1x32xf32> to vector<2x32xf32>
    %359 = arith.mulf %354, %358 : vector<2x32xf32>
    %c0_122 = arith.constant 0 : index
    %c0_123 = arith.constant 0 : index
    %360 = vector.load %arg11[%c0_122, %c0_123] : memref<4x32xf32, #tpu.memory_space<vmem>>, vector<1x32xf32>
    %361 = vector.broadcast %360 : vector<1x32xf32> to vector<2x32xf32>
    %362 = arith.mulf %359, %361 : vector<2x32xf32>
    %c1_124 = arith.constant 1 : index
    %c0_125 = arith.constant 0 : index
    %363 = vector.load %arg11[%c1_124, %c0_125] : memref<4x32xf32, #tpu.memory_space<vmem>>, vector<1x32xf32>
    %364 = vector.broadcast %363 : vector<1x32xf32> to vector<2x32xf32>
    %365 = arith.addf %362, %364 : vector<2x32xf32>
    %c0_126 = arith.constant 0 : index
    %c0_127 = arith.constant 0 : index
    %366 = vector.load %arg14[%c0_126, %c0_127] : memref<2x32xf32, #tpu.memory_space<vmem>>, vector<2x32xf32>
    tpu.vector_store %arg14[%c0_126, %c0_127], %365 {strides = array<i32>} : memref<2x32xf32, #tpu.memory_space<vmem>>, vector<2x32xf32>,
    %c0_128 = arith.constant 0 : index
    %c0_129 = arith.constant 0 : index
    %367 = vector.load %arg12[%c0_128, %c0_129] : memref<32x128xf32, #tpu.memory_space<vmem>>, vector<32x128xf32>
    %cst_130 = arith.constant dense<0.000000e+00> : vector<2x128xf32>
    %368 = tpu.matmul %365, %367, %cst_130 {dimension_numbers = #tpu.dot_dimension_numbers<[1], [0], [0], [1], [0, 0, 1, 1], [], []>} : vector<2x32xf32>, vector<32x128xf32>, vector<2x128xf32> -> vector<2x128xf32>
    %c0_131 = arith.constant 0 : index
    %c0_132 = arith.constant 0 : index
    %369 = vector.load %arg15[%c0_131, %c0_132] : memref<2x128xf32, #tpu.memory_space<vmem>>, vector<2x128xf32>
    tpu.vector_store %arg15[%c0_131, %c0_132], %368 {strides = array<i32>} : memref<2x128xf32, #tpu.memory_space<vmem>>, vector<2x128xf32>,
    return
  }
  func.func @transform_0(%arg0: i32) -> (i32, i32) {
    %c0_i32 = arith.constant 0 : i32
    %c0_i32_0 = arith.constant 0 : i32
    %c0_i32_1 = arith.constant 0 : i32
    return %c0_i32, %c0_i32_0 : i32, i32
  }
  func.func @transform_1(%arg0: i32) -> (i32, i32) {
    %c0_i32 = arith.constant 0 : i32
    %c0_i32_0 = arith.constant 0 : i32
    %c0_i32_1 = arith.constant 0 : i32
    return %c0_i32, %c0_i32_0 : i32, i32
  }
  func.func @transform_2(%arg0: i32) -> (i32, i32) {
    %c0_i32 = arith.constant 0 : i32
    %c0_i32_0 = arith.constant 0 : i32
    %c0_i32_1 = arith.constant 0 : i32
    return %c0_i32, %c0_i32_0 : i32, i32
  }
  func.func @transform_3(%arg0: i32) -> (i32, i32) {
    %c0_i32 = arith.constant 0 : i32
    %c0_i32_0 = arith.constant 0 : i32
    %c0_i32_1 = arith.constant 0 : i32
    return %c0_i32, %c0_i32_0 : i32, i32
  }
  func.func @transform_4(%arg0: i32) -> (i32, i32, i32) {
    %c0_i32 = arith.constant 0 : i32
    %c0_i32_0 = arith.constant 0 : i32
    %c0_i32_1 = arith.constant 0 : i32
    %c0_i32_2 = arith.constant 0 : i32
    return %c0_i32, %c0_i32_0, %c0_i32_1 : i32, i32, i32
  }
  func.func @transform_5(%arg0: i32) -> (i32, i32, i32) {
    %c0_i32 = arith.constant 0 : i32
    %c0_i32_0 = arith.constant 0 : i32
    %c0_i32_1 = arith.constant 0 : i32
    %c0_i32_2 = arith.constant 0 : i32
    return %c0_i32, %c0_i32_0, %c0_i32_1 : i32, i32, i32
  }
  func.func @transform_6(%arg0: i32) -> (i32, i32, i32) {
    %c0_i32 = arith.constant 0 : i32
    %c0_i32_0 = arith.constant 0 : i32
    %c0_i32_1 = arith.constant 0 : i32
    %c0_i32_2 = arith.constant 0 : i32
    return %c0_i32, %c0_i32_0, %c0_i32_1 : i32, i32, i32
  }
  func.func @transform_7(%arg0: i32) -> (i32, i32, i32) {
    %c0_i32 = arith.constant 0 : i32
    %c0_i32_0 = arith.constant 0 : i32
    %c0_i32_1 = arith.constant 0 : i32
    %c0_i32_2 = arith.constant 0 : i32
    return %c0_i32, %c0_i32_0, %c0_i32_1 : i32, i32, i32
  }
  func.func @transform_8(%arg0: i32) -> (i32, i32, i32) {
    %c0_i32 = arith.constant 0 : i32
    %c0_i32_0 = arith.constant 0 : i32
    %c0_i32_1 = arith.constant 0 : i32
    %c0_i32_2 = arith.constant 0 : i32
    return %c0_i32, %c0_i32_0, %c0_i32_1 : i32, i32, i32
  }
  func.func @transform_9(%arg0: i32) -> (i32, i32) {
    %c0_i32 = arith.constant 0 : i32
    %c0_i32_0 = arith.constant 0 : i32
    %c0_i32_1 = arith.constant 0 : i32
    return %c0_i32, %c0_i32_0 : i32, i32
  }
  func.func @transform_10(%arg0: i32) -> (i32, i32) {
    %c0_i32 = arith.constant 0 : i32
    %c0_i32_0 = arith.constant 0 : i32
    %c0_i32_1 = arith.constant 0 : i32
    return %c0_i32, %c0_i32_0 : i32, i32
  }
  func.func @transform_11(%arg0: i32) -> (i32, i32) {
    %c0_i32 = arith.constant 0 : i32
    %c0_i32_0 = arith.constant 0 : i32
    %c0_i32_1 = arith.constant 0 : i32
    return %c0_i32, %c0_i32_0 : i32, i32
  }
  func.func @transform_12(%arg0: i32) -> (i32, i32) {
    %c0_i32 = arith.constant 0 : i32
    %c0_i32_0 = arith.constant 0 : i32
    %c0_i32_1 = arith.constant 0 : i32
    return %c0_i32, %c0_i32_0 : i32, i32
  }
  func.func @transform_13(%arg0: i32) -> (i32, i32) {
    %c0_i32 = arith.constant 0 : i32
    %c0_i32_0 = arith.constant 0 : i32
    %c0_i32_1 = arith.constant 0 : i32
    return %c0_i32, %c0_i32_0 : i32, i32
  }
  func.func @transform_14(%arg0: i32) -> (i32, i32) {
    %c0_i32 = arith.constant 0 : i32
    %c0_i32_0 = arith.constant 0 : i32
    %c0_i32_1 = arith.constant 0 : i32
    return %c0_i32, %c0_i32_0 : i32, i32
  }
}

</mosaic_0001>

<bundles_post_ra>
// kernel: build_transformer_forward.1
= control target key start
LH: loop header
LB: loop body
LE: loop exit
PB: predicated region body
PF: predicated region fallthrough
CT: control target
= control target key end

     0   :  { %20 = vsyncpa [#allocation3], 0  ;;  %s4414_s0 = inlined_call_operand.vmem [shape: f32[10,256], index: 0, kind: input, shape index: {}]   ;;  %s4415_s1 = inlined_call_operand.vmem [shape: f32[256,32], index: 1, kind: input, shape index: {}]   ;;  %s4416_s2 = inlined_call_operand.vmem [shape: f32[10,32], index: 2, kind: input, shape index: {}]   ;;  %s4417_s3 = inlined_call_operand.vmem [shape: f32[10,10], index: 3, kind: input, shape index: {}]   ;;  %s4418_s4 = inlined_call_operand.vmem [shape: f32[2,32,96], index: 4, kind: input, shape index: {}]   ;;  %s4419_s5 = inlined_call_operand.vmem [shape: f32[2,32,32], index: 5, kind: input, shape index: {}]   ;;  %s4420_s6 = inlined_call_operand.vmem [shape: f32[2,32,64], index: 6, kind: input, shape index: {}]   ;;  %s4421_s7 = inlined_call_operand.vmem [shape: f32[2,64,32], index: 7, kind: input, shape index: {}]   ;;  %s4422_s8 = inlined_call_operand.vmem [shape: f32[2,8,128], index: 8, kind: input, shape index: {}]   ;;  %s4423_s9 = inlined_call_operand.vmem [shape: f32[2,32], index: 9, kind: input, shape index: {}]   ;;  %s4424_s10 = inlined_call_operand.vmem [shape: f32[4,32], index: 10, kind: input, shape index: {}]   ;;  %s4425_s11 = inlined_call_operand.vmem [shape: f32[32,128], index: 11, kind: input, shape index: {}]   ;;  %s4426_s12 = inlined_call_operand.vmem [shape: f32[10,32], index: 12, kind: output, shape index: {0}]   ;;  %s4427_s13 = inlined_call_operand.hbm [shape: f32[2,32], index: 13, kind: output, shape index: {1}]   ;;  %s4428_s14 = inlined_call_operand.hbm [shape: f32[2,128], index: 14, kind: output, shape index: {2}]  }
   0x1   :  { %v81_v0 = vld [vmem:[%s4415_s1 + $0xf8] sm:$0xff]  ;;  %v80_v2 = vld [vmem:[%s4415_s1 + $0xf0] sm:$0xff]  ;;  %v79_v4 = vld [vmem:[%s4415_s1 + $0xe8] sm:$0xff] }
   0x2   :  { %v65_v1 = vld [vmem:[%s4415_s1 + $0x78] sm:$0xff]  ;;  %3059 = vmatprep.subr.mxu0 %v81_v0  ;;  %v64_v3 = vld [vmem:[%s4415_s1 + $0x70] sm:$0xff]  ;;  %v63_v5 = vld [vmem:[%s4415_s1 + $0x68] sm:$0xff] }
   0x3   :  { %3060 = vmatpush3.msra.mxu0 %v65_v1  ;;  %v78_v6 = vld [vmem:[%s4415_s1 + $0xe0] sm:$0xff]  ;;  %v77_v8 = vld [vmem:[%s4415_s1 + $0xd8] sm:$0xff]  ;;  %v76_v10 = vld [vmem:[%s4415_s1 + $0xd0] sm:$0xff] }
   0x4   :  { %3061 = vmatprep.subr.mxu0 %v80_v2  ;;  %v62_v7 = vld [vmem:[%s4415_s1 + $0x60] sm:$0xff]  ;;  %v61_v9 = vld [vmem:[%s4415_s1 + $0x58] sm:$0xff]  ;;  %v60_v11 = vld [vmem:[%s4415_s1 + $0x50] sm:$0xff] }
   0x5   :  { %3062 = vmatpush3.msra.mxu0 %v64_v3  ;;  %v75_v12 = vld [vmem:[%s4415_s1 + $0xc8] sm:$0xff]  ;;  %v74_v15 = vld [vmem:[%s4415_s1 + $0xc0] sm:$0xff] }
   0x6   :  { %3063 = vmatprep.subr.mxu0 %v79_v4  ;;  %v47_v13 = vld [vmem:[%s4414_s0 + $0x8] sm:$0xff] }
   0x7   :  { %3064 = vmatpush3.msra.mxu0 %v63_v5  ;;  %v59_v14 = vld [vmem:[%s4415_s1 + $0x48] sm:$0xff]  ;;  %148 = vmatprep.mubr.f32.mxu0 %v47_v13 }
   0x8   :  { %3065 = vmatprep.subr.mxu0 %v78_v6 }
   0x9   :  { %3066 = vmatpush3.msra.mxu0 %v62_v7 }
   0xa   :  { %3067 = vmatprep.subr.mxu0 %v77_v8 }
   0xb   :  { %3068 = vmatpush3.msra.mxu0 %v61_v9 }
   0xc   :  { %3069 = vmatprep.subr.mxu0 %v76_v10 }
   0xd   :  { %3070 = vmatpush3.msra.mxu0 %v60_v11 }
   0xe   :  { %21 = vsyncpa [#allocation5], 0  ;;  %3071 = vmatprep.subr.mxu0 %v75_v12  ;;  %v58_v16 = vld [vmem:[%s4415_s1 + $0x40] sm:$0xff]  ;;  %v73_v17 = vld [vmem:[%s4415_s1 + $0xb8] sm:$0xff]  ;;  %vm162_vm0 = vcmask 261120   ;;  %vm166_vm1 = vcmask 254976   ;;  %v191_v3 = vlaneseq }
   0xf   :  { %3072 = vmatpush3.msra.mxu0 %v59_v14  ;;  %v57_v18 = vld [vmem:[%s4415_s1 + $0x38] sm:$0xff]  ;;  %v72_v19 = vld [vmem:[%s4415_s1 + $0xb0] sm:$0xff]  ;;  %v71_v21 = vld [vmem:[%s4415_s1 + $0xa8] sm:$0xff]  ;;  %s3607_s16 = smov 96   ;;  %vm300_vm2 = vcmask 64512   ;;  %vm390_vm3 = vcmask 74752  }
  0x10   :  { %3073 = vmatprep.subr.mxu0 %v74_v15  ;;  %v56_v20 = vld [vmem:[%s4415_s1 + $0x30] sm:$0xff]  ;;  %v55_v22 = vld [vmem:[%s4415_s1 + $0x28] sm:$0xff]  ;;  %v70_v23 = vld [vmem:[%s4415_s1 + $0xa0] sm:$0xff]  ;;  %v3838_v5 = vshrl.u32 %v191_v3, 7  ;;  %vm386_vm4 = vcmask 80896   ;;  %s3609_s21 = smov 88  }
  0x11   :  { %3074 = vmatpush3.msra.mxu0 %v58_v16  ;;  %v54_v24 = vld [vmem:[%s4415_s1 + $0x20] sm:$0xff]  ;;  %v69_v25 = vld [vmem:[%s4415_s1 + $0x98] sm:$0xff]  ;;  %v68_v27 = vld [vmem:[%s4415_s1 + $0x90] sm:$0xff]  ;;  %vm421_vm5 = vcmask 1041408   ;;  %s3610_s22 = smov 120   ;;  %s3611_s23 = smov 80  }
  0x12   :  { %3075 = vmatprep.subr.mxu0 %v73_v17  ;;  %v53_v26 = vld [vmem:[%s4415_s1 + $0x18] sm:$0xff]  ;;  %v52_v28 = vld [vmem:[%s4415_s1 + $0x10] sm:$0xff]  ;;  %v67_v29 = vld [vmem:[%s4415_s1 + $0x88] sm:$0xff]  ;;  %v193_v6 = vsub.s32 0, %v3838_v5  ;;  %v199_v8 = vsub.s32 1, %v3838_v5  ;;  %s3614_s24 = smov 48  }
  0x13   :  { %3076 = vmatpush3.msra.mxu0 %v57_v18  ;;  %v51_v30 = vld [vmem:[%s4415_s1 + $0x8] sm:$0xff]  ;;  %v66_v31 = vld [vmem:[%s4415_s1 + $0x80] sm:$0xff]  ;;  %v49_v34 = vld [vmem:[%s4414_s0 + $0x18] sm:$0x3]  ;;  %s3615_s25 = smov 72   ;;  %s3616_s26 = smov 104  }
  0x14   :  { %3077 = vmatprep.subr.mxu0 %v72_v19  ;;  %v50_v32 = vld [vmem:[%s4415_s1] sm:$0xff]  ;;  %v48_v35 = vld [vmem:[%s4414_s0 + $0x10] sm:$0x3]  ;;  %v83_v42 = vld [vmem:[%s4416_s2 + $0x8] sm:$0x3]  ;;  %v209_v19 = vsub.s32 2, %v3838_v5 }
  0x15   :  { %3078 = vmatpush3.msra.mxu0 %v56_v20  ;;  %v46_v33 = vld [vmem:[%s4414_s0] sm:$0xff]  ;;  %v206_v58 = vld [vmem:[%s4418_s4 + $0x18] sm:$0xff]  ;;  %v205_v59 = vld [vmem:[%s4418_s4 + $0x10] sm:$0xff]  ;;  %s3608_s1 = smov 64   ;;  %s3612_s0 = smov 112   ;;  %vm1128_vm6 = vcmask 130048  }
  0x16   :  { %3079 = vmatprep.subr.mxu0 %v71_v21  ;;  %v82_v37 = vld [vmem:[%s4416_s2] sm:$0xff]  ;;  %3222 = vmatprep.subr.mxu1 %v206_v58  ;;  %v204_v60 = vld [vmem:[%s4418_s4 + $0x8] sm:$0xff]  ;;  %s3613_s2 = smov 56   ;;  %s3617_s27 = smov 40   ;;  %vm1131_vm7 = vcmask 195584   ;;  %vm1380_vm8 = vcmask 523264  }
  0x17   :  { %3080 = vmatpush3.msra.mxu0 %v55_v22  ;;  %3223 = vmatpush3.msra.mxu1 %v206_v58  ;;  %v203_v61 = vld [vmem:[%s4418_s4] sm:$0xff]  ;;  %s4431_s28 = smov 8   ;;  %s4429_s29 = smov 16   ;;  %vm3622_vm9 = vmmov 0  }
  0x18   :  { %3081 = vmatprep.subr.mxu0 %v70_v23  ;;  %3224 = vmatprep.subr.mxu1 %v205_v59  ;;  %v3844_v7 = vld [vmem:[%s4422_s8] sm:$0xff]  ;;  %s4433_s30 = smov 24  }
  0x19   :  { %3082 = vmatpush3.msra.mxu0 %v54_v24  ;;  %3225 = vmatpush3.msra.mxu1 %v205_v59  ;;  %v194_v9 = vrot.slane %v3844_v7, %v193_v6  ;;  %v200_v12 = vrot.slane %v3844_v7, %v199_v8  ;;  %v210_v20 = vrot.slane %v3844_v7, %v209_v19 }
  0x1a   :  { %3083 = vmatprep.subr.mxu0 %v69_v25  ;;  %3226 = vmatprep.subr.mxu1 %v204_v60 }
  0x1b   :  { %3084 = vmatpush3.msra.mxu0 %v53_v26  ;;  %3227 = vmatpush3.msra.mxu1 %v204_v60 }
  0x1c   :  { %3085 = vmatprep.subr.mxu0 %v68_v27  ;;  %3228 = vmatprep.subr.mxu1 %v203_v61 }
  0x1d   :  { %3086 = vmatpush3.msra.mxu0 %v52_v28  ;;  %3229 = vmatpush3.msra.mxu1 %v203_v61 }
  0x1e   :  { %3087 = vmatprep.subr.mxu0 %v67_v29  ;;  %v3884_v29 = vld [vmem:[%s4417_s3 + $0x8] sm:$0x3] }
  0x1f   :  { %3088 = vmatpush3.msra.mxu0 %v51_v30 }
  0x20   :  { %3089 = vmatprep.subr.mxu0 %v66_v31  ;;  %v3889_v31 = vld [vmem:[%s4417_s3] sm:$0xff] }
  0x21   :  { %3090 = vmatpush3.msra.mxu0 %v50_v32 }
  0x22   :  { %149 = vmatmul.mubr.f32.vlgmr.msra.gmra.mxu0 %v46_v33 }
  0x23   :  { %153 = vmatprep.mubr.f32.mxu0 %v49_v34 }
  0x26   :  { %154 = vmatmul.mubr.f32.gmra.mxu0 %v48_v35 }
  0xe2   :  { %v3091_v36 = vpop.f32.mrf.mxu0 }
  0xe4   :  { %v3092_v38 = vpop.f32.mrf.mxu0 }
  0xe5   :  { %v3093_v39 = vadd.f32 %v3092_v38, %v3091_v36 }
  0xe6   :  { %v3094_v40 = vpop.f32.mrf.mxu0 }
  0xe7   :  { %v3811_v41 = vadd.f32 %v3093_v39, %v82_v37 }
  0xe8   :  { %v3095_v43 = vpop.f32.mrf.mxu0 }
  0xe9   :  { %v3096_v44 = vadd.f32 %v3095_v43, %v3094_v40  ;;  %v163_v45 = vsel %vm162_vm0, %v3811_v41, 0.0 }
  0xea   :  { %164 = vadd.xlane.f32.xlu0 %v163_v45 }
  0xeb   :  { %v3818_v46 = vadd.f32 %v3096_v44, %v83_v42 }
  0xed   :  { %v167_v47 = vsel %vm166_vm1, %v3818_v46, 0.0 }
  0xee   :  { %168 = vadd.xlane.f32.xlu0 %v167_v47 }
 0x173   :  { %v165_v48 = vpop.xlane.xlu0 %164 }
 0x174   :  { %v171_v49 = vmul.f32 0.03125, %v165_v48 }
 0x176   :  { %v173_v50 = vsub.f32 %v3811_v41, %v171_v49 }
 0x177   :  { %v169_v51 = vpop.xlane.xlu0 %168 }
 0x178   :  { %v172_v52 = vmul.f32 0.03125, %v169_v51  ;;  %v175_v53 = vmul.f32 %v173_v50, %v173_v50 }
 0x17a   :  { %v174_v54 = vsub.f32 %v3818_v46, %v172_v52  ;;  %v177_v55 = vsel %vm162_vm0, %v175_v53, 0.0 }
 0x17b   :  { %178 = vadd.xlane.f32.xlu1 %v177_v55 }
 0x17c   :  { %v176_v56 = vmul.f32 %v174_v54, %v174_v54 }
 0x17e   :  { %v180_v57 = vsel %vm166_vm1, %v176_v56, 0.0 }
 0x17f   :  { %181 = vadd.xlane.f32.xlu1 %v180_v57 }
 0x204   :  { %v179_v62 = vpop.xlane.xlu1 %178 }
 0x205   :  { %v183_v63 = vmul.f32 0.03125, %v179_v62 }
 0x207   :  { %v185_v0 = vadd.f32 1e-06, %v183_v63 }
 0x208   :  { %v182_v1 = vpop.xlane.xlu1 %181 }
 0x209   :  { %3467 = vrsqrt.f32 %v185_v0  ;;  %v184_v2 = vmul.f32 0.03125, %v182_v1 }
 0x20b   :  { %v186_v4 = vadd.f32 1e-06, %v184_v2 }
 0x20d   :  { %3469 = vrsqrt.f32 %v186_v4 }
 0x216   :  { %v3468_v10 = vpop.eup %3467 }
 0x217   :  { %v189_v11 = vmul.f32 %v3468_v10, %v173_v50 }
 0x219   :  { %v195_v13 = vmul.f32 %v194_v9, %v189_v11 }
 0x21a   :  { %v3470_v14 = vpop.eup %3469 }
 0x21b   :  { %v190_v15 = vmul.f32 %v3470_v14, %v174_v54  ;;  %v201_v16 = vadd.f32 %v200_v12, %v195_v13 }
 0x21d   :  { %v196_v17 = vmul.f32 %v194_v9, %v190_v15  ;;  %3230 = vmatprep.mubr.msk.f32.mxu1 %vm162_vm0, %v201_v16 }
 0x21f   :  { %v202_v18 = vadd.f32 %v200_v12, %v196_v17 }
 0x221   :  { %3231 = vmatmul.mubr.msk.f32.vlgmr.msra.gmra.mxu1 %vm162_vm0, %v202_v18 }
 0x2e1   :  { %v3232_v21 = vpop.f32.mrf.mxu1 }
 0x2e2   :  { %v3859_v22 = vadd.f32 %v3232_v21, %v210_v20 }
 0x2e3   :  { %v283_v23 = vpop.f32.mrf.mxu1 }
 0x2e4   :  { %v3861_v24 = vadd.f32 %v283_v23, %v210_v20  ;;  %298 = vrot.lane.b32.xlu0 %v3859_v22, %s3607_s16  ;;  %v3877_v28 = vmul.f32 0.35355338, %v3859_v22 }
 0x2e6   :  { %296 = vrot.lane.b32.xlu1 %v3861_v24, %s3607_s16  ;;  %v3868_v25 = vmul.f32 0.35355338, %v3861_v24 }
 0x2e8   :  { %3237 = vmatprep.mubr.msk.f32.mxu1 %vm300_vm2, %v3868_v25 }
 0x356   :  { %v299_v26 = vpop.permute.xlu0 %298 }
 0x357   :  { %3233 = vmatprep.subr.msk.mxu1 %vm300_vm2, %v299_v26 }
 0x358   :  { %3234 = vmatpush3.xpose.msk.msra.mxu1 %vm300_vm2, %v299_v26  ;;  %v297_v27 = vpop.permute.xlu1 %296 }
 0x359   :  { %3235 = vmatprep.subr.msk.mxu1 %vm300_vm2, %v297_v27 }
 0x35c   :  { %3236 = vmatpush3.xpose.msk.msra.mxu1 %vm300_vm2, %v297_v27 }
 0x35f   :  { %3238 = vmatmul.mubr.msk.f32.vlgmr.msra.gmra.mxu1 %vm300_vm2, %v3877_v28 }
 0x41f   :  { %v3239_v30 = vpop.f32.mrf.mxu1 }
 0x420   :  { %v383_v32 = vadd.f32 %v3239_v30, %v3884_v29 }
 0x421   :  { %v377_v33 = vpop.f32.mrf.mxu1 }
 0x422   :  { %v378_v34 = vadd.f32 %v377_v33, %v3889_v31  ;;  %v391_v35 = vsel %vm390_vm3, %v383_v32, -inf }
 0x423   :  { %392 = vmax.xlane.f32.xlu0 %v391_v35 }
 0x424   :  { %v387_v36 = vsel %vm386_vm4, %v378_v34, -inf }
 0x425   :  { %388 = vmax.xlane.f32.xlu1 %v387_v36 }
 0x436   :  { %410 = vrot.lane.b32.xlu1 %v3861_v24, %s3608_s1 }
 0x439   :  { %412 = vrot.lane.b32.xlu0 %v3859_v22, %s3608_s1 }
 0x43a   :  { %505 = vrot.lane.b32.xlu1 %v3859_v22, %s3609_s21 }
 0x43e   :  { %503 = vrot.lane.b32.xlu1 %v3861_v24, %s3609_s21 }
 0x4ac   :  { %v393_v37 = vpop.xlane.xlu0 %392 }
 0x4ad   :  { %v395_v38 = vsub.f32 %v383_v32, %v393_v37 }
 0x4ae   :  { %v389_v39 = vpop.xlane.xlu1 %388 }
 0x4af   :  { %v398_v40 = vmul.f32 1.442695, %v395_v38  ;;  %v394_v42 = vsub.f32 %v378_v34, %v389_v39 }
 0x4b0   :  { %v413_v43 = vpop.permute.xlu0 %412 }
 0x4b1   :  { %3471 = vpow2.f32 %v398_v40  ;;  %v396_v44 = vmul.f32 1.442695, %v394_v42  ;;  %3240 = vmatprep.subr.msk.mxu1 %vm421_vm5, %v413_v43 }
 0x4b2   :  { %3241 = vmatpush3.msk.msra.mxu1 %vm421_vm5, %v413_v43  ;;  %v411_v45 = vpop.permute.xlu1 %410 }
 0x4b3   :  { %3473 = vpow2.f32 %v396_v44  ;;  %3242 = vmatprep.subr.mxu1 %v411_v45 }
 0x4b4   :  { %3243 = vmatpush3.msra.mxu1 %v411_v45 }
 0x4b6   :  { %v506_v47 = vpop.permute.xlu1 %505 }
 0x4b7   :  { %3247 = vmatprep.subr.msk.mxu1 %vm300_vm2, %v506_v47 }
 0x4ba   :  { %v504_v52 = vpop.permute.xlu1 %503 }
 0x4be   :  { %v3472_v48 = vpop.eup %3471 }
 0x4bf   :  { %v403_v49 = vsel %vm390_vm3, %v3472_v48, 0.0 }
 0x4c0   :  { %v3474_v50 = vpop.eup %3473  ;;  %404 = vadd.xlane.f32.xlu1 %v403_v49 }
 0x4c1   :  { %v400_v51 = vsel %vm386_vm4, %v3474_v50, 0.0 }
 0x4c2   :  { %401 = vadd.xlane.f32.xlu0 %v400_v51 }
 0x4d1   :  { %499 = vrot.lane.b32.xlu1 %v3868_v25, %s3610_s22 }
 0x4d5   :  { %704 = vrot.lane.b32.xlu1 %v3861_v24, %s3611_s23 }
 0x4d8   :  { %706 = vrot.lane.b32.xlu0 %v3859_v22, %s3611_s23 }
 0x4d9   :  { %702 = vrot.lane.b32.xlu1 %v3877_v28, %s3612_s0 }
 0x4dc   :  { %501 = vrot.lane.b32.xlu0 %v3877_v28, %s3610_s22 }
 0x4e0   :  { %700 = vrot.lane.b32.xlu0 %v3868_v25, %s3612_s0 }
 0x549   :  { %v405_v53 = vpop.xlane.xlu1 %404 }
 0x54a   :  { %3475 = vrcp.f32 %v405_v53 }
 0x54b   :  { %v402_v54 = vpop.xlane.xlu0 %401 }
 0x54c   :  { %3477 = vrcp.f32 %v402_v54 }
 0x54d   :  { %v500_v55 = vpop.permute.xlu1 %499 }
 0x54f   :  { %v707_v56 = vpop.permute.xlu0 %706 }
 0x550   :  { %3261 = vmatprep.subr.msk.mxu0 %vm300_vm2, %v707_v56 }
 0x551   :  { %3262 = vmatpush3.xpose.msk.msra.mxu0 %vm300_vm2, %v707_v56  ;;  %v705_v57 = vpop.permute.xlu1 %704 }
 0x552   :  { %3263 = vmatprep.subr.msk.mxu0 %vm300_vm2, %v705_v57 }
 0x553   :  { %v502_v58 = vpop.permute.xlu0 %501 }
 0x555   :  { %3264 = vmatpush3.xpose.msk.msra.mxu0 %vm300_vm2, %v705_v57  ;;  %v703_v61 = vpop.permute.xlu1 %702 }
 0x557   :  { %v701_v59 = vpop.permute.xlu0 %700  ;;  %v3476_v60 = vpop.eup %3475 }
 0x558   :  { %3265 = vmatprep.mubr.msk.f32.mxu0 %vm300_vm2, %v701_v59  ;;  %v409_v0 = vmul.f32 %v3476_v60, %v3472_v48 }
 0x559   :  { %v3478_v62 = vpop.eup %3477  ;;  %3266 = vmatmul.mubr.msk.f32.vlgmr.msra.gmra.mxu0 %vm300_vm2, %v703_v61 }
 0x55a   :  { %v407_v63 = vmul.f32 %v3478_v62, %v3474_v50 }
 0x55c   :  { %3244 = vmatprep.mubr.msk.f32.mxu1 %vm386_vm4, %v407_v63 }
 0x55d   :  { %3245 = vmatmul.mubr.msk.f32.vlgmr.msra.gmra.mxu1 %vm386_vm4, %v409_v0 }
 0x55e   :  { %3248 = vmatpush3.xpose.msk.msra.mxu1 %vm300_vm2, %v506_v47  ;;  %3251 = vmatprep.mubr.msk.f32.mxu1 %vm300_vm2, %v500_v55 }
 0x55f   :  { %3249 = vmatprep.subr.msk.mxu1 %vm300_vm2, %v504_v52 }
 0x562   :  { %3250 = vmatpush3.xpose.msk.msra.mxu1 %vm300_vm2, %v504_v52 }
 0x565   :  { %3252 = vmatmul.mubr.msk.f32.vlgmr.msra.gmra.mxu1 %vm300_vm2, %v502_v58 }
 0x619   :  { %v3267_v2 = vpop.f32.mrf.mxu0 }
 0x61a   :  { %v788_v16 = vadd.f32 %v3267_v2, %v3884_v29 }
 0x61b   :  { %v782_v10 = vpop.f32.mrf.mxu0 }
 0x61c   :  { %v783_v14 = vadd.f32 %v782_v10, %v3889_v31  ;;  %v794_v18 = vsel %vm390_vm3, %v788_v16, -inf }
 0x61d   :  { %v3933_v1 = vpop.f32.mrf.mxu1 }
 0x61e   :  { %v791_v17 = vsel %vm386_vm4, %v783_v14, -inf }
 0x61f   :  { %v3935_v3 = vpop.f32.mrf.mxu1 }
 0x625   :  { %v3253_v4 = vpop.f32.mrf.mxu1 }
 0x626   :  { %v587_v9 = vadd.f32 %v3253_v4, %v3884_v29 }
 0x627   :  { %v581_v11 = vpop.f32.mrf.mxu1 }
 0x628   :  { %v582_v12 = vadd.f32 %v581_v11, %v3889_v31  ;;  %v593_v13 = vsel %vm390_vm3, %v587_v9, -inf }
 0x629   :  { %594 = vmax.xlane.f32.xlu1 %v593_v13 }
 0x62a   :  { %v590_v15 = vsel %vm386_vm4, %v582_v12, -inf }
 0x62b   :  { %591 = vmax.xlane.f32.xlu0 %v590_v15 }
 0x62f   :  { %792 = vmax.xlane.f32.xlu0 %v791_v17 }
 0x633   :  { %795 = vmax.xlane.f32.xlu0 %v794_v18 }
 0x6b2   :  { %v595_v23 = vpop.xlane.xlu1 %594 }
 0x6b3   :  { %v597_v30 = vsub.f32 %v587_v9, %v595_v23 }
 0x6b4   :  { %v592_v20 = vpop.xlane.xlu0 %591 }
 0x6b5   :  { %v596_v21 = vsub.f32 %v582_v12, %v592_v20  ;;  %v600_v36 = vmul.f32 1.442695, %v597_v30 }
 0x6b7   :  { %v598_v32 = vmul.f32 1.442695, %v596_v21 }
 0x6b8   :  { %v793_v26 = vpop.xlane.xlu0 %792 }
 0x6b9   :  { %v797_v27 = vsub.f32 %v783_v14, %v793_v26 }
 0x6bb   :  { %v799_v33 = vmul.f32 1.442695, %v797_v27 }
 0x6bc   :  { %v796_v34 = vpop.xlane.xlu0 %795 }
 0x6bd   :  { %3479 = vpow2.f32 %v799_v33  ;;  %v798_v35 = vsub.f32 %v788_v16, %v796_v34 }
 0x6be   :  { %3481 = vpow2.f32 %v598_v32 }
 0x6bf   :  { %v801_v37 = vmul.f32 1.442695, %v798_v35 }
 0x6c1   :  { %3483 = vpow2.f32 %v801_v37 }
 0x6c2   :  { %3485 = vpow2.f32 %v600_v36 }
 0x6ca   :  { %v3480_v38 = vpop.eup %3479 }
 0x6cb   :  { %v803_v39 = vsel %vm386_vm4, %v3480_v38, 0.0  ;;  %v3482_v40 = vpop.eup %3481 }
 0x6cc   :  { %804 = vadd.xlane.f32.xlu0 %v803_v39  ;;  %v602_v43 = vsel %vm386_vm4, %v3482_v40, 0.0 }
 0x6ce   :  { %v3484_v42 = vpop.eup %3483 }
 0x6cf   :  { %v806_v44 = vsel %vm390_vm3, %v3484_v42, 0.0  ;;  %v3486_v45 = vpop.eup %3485 }
 0x6d0   :  { %603 = vadd.xlane.f32.xlu0 %v602_v43  ;;  %807 = vadd.xlane.f32.xlu1 %v806_v44  ;;  %v605_v47 = vsel %vm390_vm3, %v3486_v45, 0.0  ;;  %v1136_v43 = vld [vmem:[%s4419_s5 + $0x10] sm:$0xff]  ;;  %v1135_v44 = vld [vmem:[%s4419_s5 + $0x8] sm:$0xff] }
 0x6d4   :  { %606 = vadd.xlane.f32.xlu1 %v605_v47 }
 0x6e5   :  { %612 = vrot.lane.b32.xlu1 %v3861_v24, %s3613_s2 }
 0x6e6   :  { %614 = vrot.lane.b32.xlu0 %v3859_v22, %s3613_s2 }
 0x6e9   :  { %815 = vrot.lane.b32.xlu1 %v3859_v22, %s3614_s24 }
 0x6ea   :  { %907 = vrot.lane.b32.xlu0 %v3859_v22, %s3615_s25 }
 0x6ed   :  { %813 = vrot.lane.b32.xlu1 %v3861_v24, %s3614_s24 }
 0x6ee   :  { %901 = vrot.lane.b32.xlu0 %v3868_v25, %s3616_s26 }
 0x6f1   :  { %905 = vrot.lane.b32.xlu1 %v3861_v24, %s3615_s25 }
 0x6f5   :  { %903 = vrot.lane.b32.xlu1 %v3877_v28, %s3616_s26 }
 0x755   :  { %v805_v48 = vpop.xlane.xlu0 %804 }
 0x759   :  { %v604_v49 = vpop.xlane.xlu0 %603  ;;  %v808_v50 = vpop.xlane.xlu1 %807 }
 0x75a   :  { %3487 = vrcp.f32 %v604_v49 }
 0x75b   :  { %3489 = vrcp.f32 %v805_v48 }
 0x75d   :  { %v615_v51 = vpop.permute.xlu0 %614  ;;  %v607_v52 = vpop.xlane.xlu1 %606 }
 0x75e   :  { %3491 = vrcp.f32 %v607_v52  ;;  %3254 = vmatprep.subr.msk.mxu1 %vm421_vm5, %v615_v51 }
 0x75f   :  { %3255 = vmatpush3.msk.msra.mxu1 %vm421_vm5, %v615_v51  ;;  %3493 = vrcp.f32 %v808_v50 }
 0x761   :  { %v613_v25 = vpop.permute.xlu1 %612  ;;  %v908_v57 = vpop.permute.xlu0 %907 }
 0x762   :  { %3256 = vmatprep.subr.mxu1 %v613_v25 }
 0x763   :  { %3257 = vmatpush3.msra.mxu1 %v613_v25 }
 0x765   :  { %v816_v53 = vpop.permute.xlu1 %815  ;;  %v902_v63 = vpop.permute.xlu0 %901 }
 0x766   :  { %3268 = vmatprep.subr.msk.mxu1 %vm421_vm5, %v816_v53 }
 0x767   :  { %v3488_v28 = vpop.eup %3487 }
 0x768   :  { %v609_v54 = vmul.f32 %v3488_v28, %v3482_v40  ;;  %v3490_v55 = vpop.eup %3489 }
 0x769   :  { %v814_v60 = vpop.permute.xlu1 %813  ;;  %v810_v61 = vmul.f32 %v3490_v55, %v3480_v38 }
 0x76a   :  { %3258 = vmatprep.mubr.msk.f32.mxu1 %vm386_vm4, %v609_v54 }
 0x76b   :  { %v3492_v56 = vpop.eup %3491 }
 0x76c   :  { %v611_v58 = vmul.f32 %v3492_v56, %v3486_v45  ;;  %v3494_v59 = vpop.eup %3493  ;;  %v1134_v45 = vld [vmem:[%s4419_s5] sm:$0xff] }
 0x76d   :  { %v812_v62 = vmul.f32 %v3494_v59, %v3484_v42  ;;  %v906_v0 = vpop.permute.xlu1 %905 }
 0x76e   :  { %3259 = vmatmul.mubr.msk.f32.vlgmr.msra.gmra.mxu1 %vm386_vm4, %v611_v58 }
 0x76f   :  { %3269 = vmatpush3.msk.msra.mxu1 %vm421_vm5, %v816_v53  ;;  %3272 = vmatprep.mubr.msk.f32.mxu1 %vm386_vm4, %v810_v61 }
 0x770   :  { %3270 = vmatprep.subr.mxu1 %v814_v60 }
 0x771   :  { %3271 = vmatpush3.msra.mxu1 %v814_v60  ;;  %v904_v2 = vpop.permute.xlu1 %903 }
 0x772   :  { %3275 = vmatprep.subr.msk.mxu1 %vm300_vm2, %v908_v57  ;;  %3273 = vmatmul.mubr.msk.f32.vlgmr.msra.gmra.mxu1 %vm386_vm4, %v812_v62 }
 0x773   :  { %3276 = vmatpush3.xpose.msk.msra.mxu1 %vm300_vm2, %v908_v57  ;;  %3279 = vmatprep.mubr.msk.f32.mxu1 %vm300_vm2, %v902_v63 }
 0x774   :  { %3277 = vmatprep.subr.msk.mxu1 %vm300_vm2, %v906_v0 }
 0x777   :  { %3278 = vmatpush3.xpose.msk.msra.mxu1 %vm300_vm2, %v906_v0 }
 0x77a   :  { %3280 = vmatmul.mubr.msk.f32.vlgmr.msra.gmra.mxu1 %vm300_vm2, %v904_v2 }
 0x82e   :  { %v3260_v4 = vpop.f32.mrf.mxu1 }
 0x830   :  { %v691_v9 = vpop.f32.mrf.mxu1 }
 0x832   :  { %v3274_v10 = vpop.f32.mrf.mxu1 }
 0x834   :  { %v892_v11 = vpop.f32.mrf.mxu1 }
 0x83a   :  { %v3281_v12 = vpop.f32.mrf.mxu1 }
 0x83b   :  { %v989_v13 = vadd.f32 %v3281_v12, %v3884_v29 }
 0x83c   :  { %v983_v14 = vpop.f32.mrf.mxu1 }
 0x83d   :  { %v984_v15 = vadd.f32 %v983_v14, %v3889_v31  ;;  %v995_v16 = vsel %vm390_vm3, %v989_v13, -inf }
 0x83e   :  { %996 = vmax.xlane.f32.xlu1 %v995_v16 }
 0x83f   :  { %v992_v17 = vsel %vm386_vm4, %v984_v15, -inf }
 0x840   :  { %993 = vmax.xlane.f32.xlu0 %v992_v17  ;;  %v1268_v17 = vld [vmem:[%s4420_s6 + $0x18] sm:$0xff] }
 0x84f   :  { %1014 = vrot.lane.b32.xlu1 %v3861_v24, %s3617_s27 }
 0x853   :  { %1104 = vrot.lane.b32.xlu1 %v691_v9, %s4431_s28 }
 0x857   :  { %1106 = vrot.lane.b32.xlu1 %v3260_v4, %s4431_s28 }
 0x85b   :  { %1114 = vrot.lane.b32.xlu1 %v3274_v10, %s4429_s29 }
 0x8c7   :  { %v997_v18 = vpop.xlane.xlu1 %996 }
 0x8c8   :  { %v999_v20 = vsub.f32 %v989_v13, %v997_v18  ;;  %v1267_v18 = vld [vmem:[%s4420_s6 + $0x10] sm:$0xff] }
 0x8c9   :  { %v994_v21 = vpop.xlane.xlu0 %993 }
 0x8ca   :  { %v1002_v23 = vmul.f32 1.442695, %v999_v20  ;;  %v998_v26 = vsub.f32 %v984_v15, %v994_v21  ;;  %v1266_v20 = vld [vmem:[%s4420_s6 + $0x8] sm:$0xff]  ;;  %v1265_v21 = vld [vmem:[%s4420_s6] sm:$0xff] }
 0x8cb   :  { %v1015_v37 = vpop.permute.xlu1 %1014 }
 0x8cc   :  { %3495 = vpow2.f32 %v1002_v23  ;;  %v1000_v27 = vmul.f32 1.442695, %v998_v26 }
 0x8ce   :  { %3497 = vpow2.f32 %v1000_v27 }
 0x8cf   :  { %v1105_v49 = vpop.permute.xlu1 %1104 }
 0x8d0   :  { %v1126_v25 = vsel %vm300_vm2, %v3935_v3, %v1105_v49  ;;  %v1223_v3 = vsub.s32 3, %v3838_v5  ;;  %v1376_v49 = vld [vmem:[%s4421_s7 + $0x20] sm:$0xff] }
 0x8d2   :  { %v1224_v59 = vrot.slane %v3844_v7, %v1223_v3 }
 0x8d3   :  { %v1107_v50 = vpop.permute.xlu1 %1106 }
 0x8d4   :  { %v1127_v28 = vsel %vm300_vm2, %v3933_v1, %v1107_v50  ;;  %v1375_v50 = vld [vmem:[%s4421_s7 + $0x18] sm:$0xff] }
 0x8d7   :  { %v1115_v51 = vpop.permute.xlu1 %1114 }
 0x8d8   :  { %v1130_v56 = vsel %vm1128_vm6, %v1127_v28, %v1115_v51  ;;  %v1374_v51 = vld [vmem:[%s4421_s7 + $0x10] sm:$0xff] }
 0x8d9   :  { %v3496_v30 = vpop.eup %3495 }
 0x8da   :  { %v1007_v32 = vsel %vm390_vm3, %v3496_v30, 0.0 }
 0x8db   :  { %v3498_v24 = vpop.eup %3497  ;;  %1008 = vadd.xlane.f32.xlu0 %v1007_v32 }
 0x8dc   :  { %v1004_v33 = vsel %vm386_vm4, %v3498_v24, 0.0 }
 0x8df   :  { %1005 = vadd.xlane.f32.xlu0 %v1004_v33  ;;  %v1255_v33 = vsub.s32 4, %v3838_v5 }
 0x8f5   :  { %1016 = vrot.lane.b32.xlu0 %v3859_v22, %s3617_s27  ;;  %v1137_v22 = vld [vmem:[%s4419_s5 + $0x18] sm:$0xff] }
 0x8f6   :  { %3289 = vmatprep.subr.mxu0 %v1137_v22 }
 0x8f7   :  { %3290 = vmatpush3.msra.mxu0 %v1137_v22 }
 0x8f8   :  { %3291 = vmatprep.subr.mxu0 %v1136_v43 }
 0x8f9   :  { %1112 = vrot.lane.b32.xlu0 %v892_v11, %s4429_s29  ;;  %3292 = vmatpush3.msra.mxu0 %v1136_v43  ;;  %s4437_s29 = smov 24  }
 0x8fa   :  { %3293 = vmatprep.subr.mxu0 %v1135_v44 }
 0x8fb   :  { %3294 = vmatpush3.msra.mxu0 %v1135_v44 }
 0x8fc   :  { %3295 = vmatprep.subr.mxu0 %v1134_v45 }
 0x8fd   :  { %3296 = vmatpush3.msra.mxu0 %v1134_v45  ;;  %v1379_v45 = vld [vmem:[%s4421_s7 + $0x38] sm:$0xff] }
 0x8fe   :  { %3311 = vmatprep.subr.mxu0 %v1379_v45 }
 0x964   :  { %v1009_v34 = vpop.xlane.xlu0 %1008 }
 0x965   :  { %3499 = vrcp.f32 %v1009_v34  ;;  %v1261_v34 = vsub.s32 5, %v3838_v5 }
 0x968   :  { %v1006_v35 = vpop.xlane.xlu0 %1005 }
 0x969   :  { %3501 = vrcp.f32 %v1006_v35  ;;  %v1256_v35 = vrot.slane %v3844_v7, %v1255_v33 }
 0x96c   :  { %v1017_v36 = vpop.permute.xlu0 %1016 }
 0x96d   :  { %3282 = vmatprep.subr.msk.mxu1 %vm421_vm5, %v1017_v36 }
 0x96e   :  { %3283 = vmatpush3.msk.msra.mxu1 %vm421_vm5, %v1017_v36 }
 0x96f   :  { %3284 = vmatprep.subr.mxu1 %v1015_v37 }
 0x970   :  { %3285 = vmatpush3.msra.mxu1 %v1015_v37  ;;  %v1113_v52 = vpop.permute.xlu0 %1112 }
 0x971   :  { %v1129_v54 = vsel %vm1128_vm6, %v1126_v25, %v1113_v52  ;;  %3300 = vmatprep.subr.mxu1 %v1268_v17  ;;  %v1373_v52 = vld [vmem:[%s4421_s7 + $0x8] sm:$0xff]  ;;  %v1372_v25 = vld [vmem:[%s4421_s7] sm:$0xff] }
 0x972   :  { %v3500_v38 = vpop.eup %3499 }
 0x973   :  { %v1013_v42 = vmul.f32 %v3500_v38, %v3496_v30  ;;  %v1262_v38 = vrot.slane %v3844_v7, %v1261_v34 }
 0x976   :  { %v3502_v39 = vpop.eup %3501 }
 0x977   :  { %v1011_v40 = vmul.f32 %v3502_v39, %v3498_v24 }
 0x979   :  { %3286 = vmatprep.mubr.msk.f32.mxu1 %vm386_vm4, %v1011_v40 }
 0x97a   :  { %3287 = vmatmul.mubr.msk.f32.vlgmr.msra.gmra.mxu1 %vm386_vm4, %v1013_v42 }
 0x97b   :  { %3301 = vmatpush3.msra.mxu1 %v1268_v17  ;;  %v1466_v17 = vsub.s32 7, %v3838_v5 }
 0x97c   :  { %3302 = vmatprep.subr.mxu1 %v1267_v18 }
 0x97d   :  { %3303 = vmatpush3.msra.mxu1 %v1267_v18  ;;  %v1467_v18 = vrot.slane %v3844_v7, %v1466_v17 }
 0x97e   :  { %3304 = vmatprep.subr.mxu1 %v1266_v20 }
 0x97f   :  { %3305 = vmatpush3.msra.mxu1 %v1266_v20 }
 0x980   :  { %3306 = vmatprep.subr.mxu1 %v1265_v21 }
 0x981   :  { %3307 = vmatpush3.msra.mxu1 %v1265_v21 }
 0xa3a   :  { %v3288_v47 = vpop.f32.mrf.mxu1 }
 0xa3b   :  { %1122 = vrot.lane.b32.xlu1 %v3288_v47, %s4433_s30  ;;  %v1378_v47 = vld [vmem:[%s4421_s7 + $0x30] sm:$0xff] }
 0xa3c   :  { %v1093_v48 = vpop.f32.mrf.mxu1 }
 0xa3d   :  { %1120 = vrot.lane.b32.xlu0 %v1093_v48, %s4433_s30  ;;  %v1377_v48 = vld [vmem:[%s4421_s7 + $0x28] sm:$0xff] }
 0xaad   :  { %v1123_v53 = vpop.permute.xlu1 %1122 }
 0xaae   :  { %v1133_v58 = vsel %vm1131_vm7, %v1130_v56, %v1123_v53  ;;  %v1271_v53 = vsub.s32 6, %v3838_v5 }
 0xaaf   :  { %v1121_v55 = vpop.permute.xlu0 %1120 }
 0xab0   :  { %v1132_v57 = vsel %vm1131_vm7, %v1129_v54, %v1121_v55  ;;  %v1272_v28 = vrot.slane %v3844_v7, %v1271_v53 }
 0xab1   :  { %3297 = vmatprep.mubr.msk.f32.mxu0 %vm162_vm0, %v1132_v57 }
 0xab2   :  { %3298 = vmatmul.mubr.msk.f32.vlgmr.msra.gmra.mxu0 %vm162_vm0, %v1133_v58 }
 0xab3   :  { %3312 = vmatpush3.msra.mxu0 %v1379_v45  ;;  %v2998_v45 = vld [vmem:[%s4418_s4 + $0x20] sm:$0xff] }
 0xab4   :  { %3313 = vmatprep.subr.mxu0 %v1378_v47 }
 0xab5   :  { %3314 = vmatpush3.msra.mxu0 %v1378_v47 }
 0xab6   :  { %3315 = vmatprep.subr.mxu0 %v1377_v48 }
 0xab7   :  { %3316 = vmatpush3.msra.mxu0 %v1377_v48 }
 0xab8   :  { %3317 = vmatprep.subr.mxu0 %v1376_v49 }
 0xab9   :  { %3318 = vmatpush3.msra.mxu0 %v1376_v49 }
 0xaba   :  { %3319 = vmatprep.subr.mxu0 %v1375_v50 }
 0xabb   :  { %3320 = vmatpush3.msra.mxu0 %v1375_v50 }
 0xabc   :  { %3321 = vmatprep.subr.mxu0 %v1374_v51 }
 0xabd   :  { %3322 = vmatpush3.msra.mxu0 %v1374_v51 }
 0xabe   :  { %3323 = vmatprep.subr.mxu0 %v1373_v52 }
 0xabf   :  { %3324 = vmatpush3.msra.mxu0 %v1373_v52 }
 0xac0   :  { %3325 = vmatprep.subr.mxu0 %v1372_v25 }
 0xac1   :  { %3326 = vmatpush3.msra.mxu0 %v1372_v25  ;;  %v4124_v25 = vld [vmem:[%s4422_s8 + $0x8] sm:$0xff] }
 0xb72   :  { %v3299_v1 = vpop.f32.mrf.mxu0 }
 0xb73   :  { %v1220_v60 = vadd.f32 %v3299_v1, %v3818_v46 }
 0xb74   :  { %v1210_v61 = vpop.f32.mrf.mxu0 }
 0xb75   :  { %v4026_v62 = vadd.f32 %v1224_v59, %v1220_v60  ;;  %v1219_v63 = vadd.f32 %v1210_v61, %v3811_v41 }
 0xb77   :  { %v4029_v0 = vadd.f32 %v1224_v59, %v1219_v63  ;;  %v1230_v2 = vsel %vm166_vm1, %v4026_v62, 0.0 }
 0xb78   :  { %1231 = vadd.xlane.f32.xlu1 %v1230_v2 }
 0xb79   :  { %v1227_v4 = vsel %vm162_vm0, %v4029_v0, 0.0 }
 0xb7a   :  { %1228 = vadd.xlane.f32.xlu0 %v1227_v4 }
 0xc01   :  { %v1232_v9 = vpop.xlane.xlu1 %1231 }
 0xc02   :  { %v1234_v10 = vmul.f32 0.03125, %v1232_v9 }
 0xc03   :  { %v1229_v11 = vpop.xlane.xlu0 %1228 }
 0xc04   :  { %v1233_v12 = vmul.f32 0.03125, %v1229_v11  ;;  %v1236_v46 = vsub.f32 %v4026_v62, %v1234_v10 }
 0xc06   :  { %v1235_v13 = vsub.f32 %v4029_v0, %v1233_v12  ;;  %v1238_v15 = vmul.f32 %v1236_v46, %v1236_v46 }
 0xc08   :  { %v1237_v14 = vmul.f32 %v1235_v13, %v1235_v13  ;;  %v1242_v16 = vsel %vm166_vm1, %v1238_v15, 0.0 }
 0xc0a   :  { %v1239_v41 = vsel %vm162_vm0, %v1237_v14, 0.0 }
 0xc0b   :  { %1240 = vadd.xlane.f32.xlu0 %v1239_v41 }
 0xc0f   :  { %1243 = vadd.xlane.f32.xlu0 %v1242_v16 }
 0xc94   :  { %v1241_v23 = vpop.xlane.xlu0 %1240 }
 0xc95   :  { %v1245_v26 = vmul.f32 0.03125, %v1241_v23 }
 0xc97   :  { %v1247_v27 = vadd.f32 1e-06, %v1245_v26 }
 0xc98   :  { %v1244_v30 = vpop.xlane.xlu0 %1243 }
 0xc99   :  { %3503 = vrsqrt.f32 %v1247_v27  ;;  %v1246_v32 = vmul.f32 0.03125, %v1244_v30 }
 0xc9b   :  { %v1248_v24 = vadd.f32 1e-06, %v1246_v32 }
 0xc9d   :  { %3505 = vrsqrt.f32 %v1248_v24 }
 0xca6   :  { %v3504_v36 = vpop.eup %3503 }
 0xca7   :  { %v1251_v37 = vmul.f32 %v3504_v36, %v1235_v13 }
 0xca9   :  { %v1257_v39 = vmul.f32 %v1256_v35, %v1251_v37 }
 0xcaa   :  { %v3506_v40 = vpop.eup %3505 }
 0xcab   :  { %v1252_v42 = vmul.f32 %v3506_v40, %v1236_v46  ;;  %v1263_v22 = vadd.f32 %v1262_v38, %v1257_v39 }
 0xcad   :  { %v1258_v43 = vmul.f32 %v1256_v35, %v1252_v42  ;;  %3308 = vmatprep.mubr.msk.f32.mxu1 %vm162_vm0, %v1263_v22  ;;  %v3001_v22 = vld [vmem:[%s4418_s4 + $0x38] sm:$0xff] }
 0xcae   :  { %3330 = vmatprep.subr.mxu1 %v3001_v22 }
 0xcaf   :  { %v1264_v44 = vadd.f32 %v1262_v38, %v1258_v43  ;;  %v3000_v43 = vld [vmem:[%s4418_s4 + $0x30] sm:$0xff] }
 0xcb1   :  { %3309 = vmatmul.mubr.msk.f32.vlgmr.msra.gmra.mxu1 %vm162_vm0, %v1264_v44  ;;  %v2999_v44 = vld [vmem:[%s4418_s4 + $0x28] sm:$0xff] }
 0xcb2   :  { %3331 = vmatpush3.msra.mxu1 %v3001_v22 }
 0xcb3   :  { %3332 = vmatprep.subr.mxu1 %v3000_v43 }
 0xcb4   :  { %3333 = vmatpush3.msra.mxu1 %v3000_v43 }
 0xcb5   :  { %3334 = vmatprep.subr.mxu1 %v2999_v44 }
 0xcb6   :  { %3335 = vmatpush3.msra.mxu1 %v2999_v44 }
 0xcb7   :  { %3336 = vmatprep.subr.mxu1 %v2998_v45 }
 0xcb8   :  { %3337 = vmatpush3.msra.mxu1 %v2998_v45 }
 0xd71   :  { %v3310_v54 = vpop.f32.mrf.mxu1 }
 0xd72   :  { %v1351_v55 = vadd.f32 %v3310_v54, %v1272_v28 }
 0xd73   :  { %v1345_v56 = vpop.f32.mrf.mxu1 }
 0xd74   :  { %v1355_v57 = vmul.f32 %v1351_v55, %v1351_v55  ;;  %v1346_v58 = vadd.f32 %v1345_v56, %v1272_v28  ;;  %v1501_v28 = vrot.slane %v4124_v25, %v193_v6  ;;  %v1518_v6 = vrot.slane %v4124_v25, %v209_v19 }
 0xd76   :  { %v1357_v59 = vmul.f32 %v1355_v57, %v1351_v55  ;;  %v1354_v1 = vmul.f32 %v1346_v58, %v1346_v58 }
 0xd78   :  { %v1359_v60 = vmul.f32 0.044715, %v1357_v59  ;;  %v1356_v61 = vmul.f32 %v1354_v1, %v1346_v58 }
 0xd7a   :  { %v1361_v63 = vadd.f32 %v1359_v60, %v1351_v55  ;;  %v1358_v2 = vmul.f32 0.044715, %v1356_v61 }
 0xd7c   :  { %v1363_v4 = vmul.f32 0.7978846, %v1361_v63  ;;  %v1360_v9 = vadd.f32 %v1358_v2, %v1346_v58 }
 0xd7e   :  { %3507 = vtanh.f32 %v1363_v4  ;;  %v1362_v10 = vmul.f32 0.7978846, %v1360_v9 }
 0xd80   :  { %3509 = vtanh.f32 %v1362_v10 }
 0xd8b   :  { %v3508_v11 = vpop.eup %3507 }
 0xd8c   :  { %v1367_v12 = vadd.f32 1.0, %v3508_v11 }
 0xd8d   :  { %v3510_v46 = vpop.eup %3509 }
 0xd8e   :  { %v1366_v13 = vadd.f32 1.0, %v3510_v46  ;;  %v1369_v14 = vmul.f32 0.5, %v1367_v12 }
 0xd90   :  { %v1368_v41 = vmul.f32 0.5, %v1366_v13  ;;  %v1371_v16 = vmul.f32 %v1369_v14, %v1351_v55  ;;  %v1507_v55 = vrot.slane %v4124_v25, %v199_v8 }
 0xd92   :  { %v1370_v15 = vmul.f32 %v1368_v41, %v1346_v58 }
 0xd94   :  { %3327 = vmatprep.mubr.msk.f32.mxu0 %vm1380_vm8, %v1370_v15 }
 0xd95   :  { %3328 = vmatmul.mubr.msk.f32.vlgmr.msra.gmra.mxu0 %vm1380_vm8, %v1371_v16 }
 0xe55   :  { %v3329_v20 = vpop.f32.mrf.mxu0 }
 0xe56   :  { %v1463_v21 = vadd.f32 %v3329_v20, %v4026_v62 }
 0xe57   :  { %v1453_v23 = vpop.f32.mrf.mxu0 }
 0xe58   :  { %v4096_v26 = vadd.f32 %v1467_v18, %v1463_v21  ;;  %v1462_v27 = vadd.f32 %v1453_v23, %v4029_v0 }
 0xe5a   :  { %v4099_v30 = vadd.f32 %v1467_v18, %v1462_v27  ;;  %v1475_v32 = vsel %vm166_vm1, %v4096_v26, 0.0 }
 0xe5b   :  { %1476 = vadd.xlane.f32.xlu1 %v1475_v32 }
 0xe5c   :  { %v1472_v24 = vsel %vm162_vm0, %v4099_v30, 0.0 }
 0xe5d   :  { %1473 = vadd.xlane.f32.xlu0 %v1472_v24 }
 0xee4   :  { %v1477_v35 = vpop.xlane.xlu1 %1476 }
 0xee5   :  { %v1479_v7 = vmul.f32 0.03125, %v1477_v35 }
 0xee6   :  { %v1474_v36 = vpop.xlane.xlu0 %1473 }
 0xee7   :  { %v1481_v62 = vsub.f32 %v4096_v26, %v1479_v7  ;;  %v1478_v37 = vmul.f32 0.03125, %v1474_v36 }
 0xee9   :  { %v1480_v38 = vsub.f32 %v4099_v30, %v1478_v37  ;;  %v1483_v39 = vmul.f32 %v1481_v62, %v1481_v62 }
 0xeeb   :  { %v1487_v0 = vsel %vm166_vm1, %v1483_v39, 0.0  ;;  %v1482_v40 = vmul.f32 %v1480_v38, %v1480_v38 }
 0xeec   :  { %1488 = vadd.xlane.f32.xlu1 %v1487_v0 }
 0xeed   :  { %v1484_v42 = vsel %vm162_vm0, %v1482_v40, 0.0 }
 0xeee   :  { %1485 = vadd.xlane.f32.xlu0 %v1484_v42 }
 0xf75   :  { %v1489_v47 = vpop.xlane.xlu1 %1488 }
 0xf76   :  { %v1491_v48 = vmul.f32 0.03125, %v1489_v47 }
 0xf77   :  { %v1486_v49 = vpop.xlane.xlu0 %1485 }
 0xf78   :  { %v1493_v50 = vadd.f32 1e-06, %v1491_v48  ;;  %v1490_v51 = vmul.f32 0.03125, %v1486_v49 }
 0xf7a   :  { %3511 = vrsqrt.f32 %v1493_v50  ;;  %v1492_v52 = vadd.f32 1e-06, %v1490_v51 }
 0xf7c   :  { %3513 = vrsqrt.f32 %v1492_v52 }
 0xf87   :  { %v3512_v54 = vpop.eup %3511 }
 0xf88   :  { %v1497_v56 = vmul.f32 %v3512_v54, %v1481_v62 }
 0xf89   :  { %v3514_v57 = vpop.eup %3513 }
 0xf8a   :  { %v1496_v58 = vmul.f32 %v3514_v57, %v1480_v38  ;;  %v1503_v59 = vmul.f32 %v1501_v28, %v1497_v56 }
 0xf8c   :  { %v1502_v1 = vmul.f32 %v1501_v28, %v1496_v58  ;;  %v1509_v60 = vadd.f32 %v1507_v55, %v1503_v59 }
 0xf8e   :  { %v1508_v61 = vadd.f32 %v1507_v55, %v1502_v1 }
 0xf90   :  { %3338 = vmatprep.mubr.msk.f32.mxu1 %vm162_vm0, %v1508_v61 }
 0xf91   :  { %3339 = vmatmul.mubr.msk.f32.vlgmr.msra.gmra.mxu1 %vm162_vm0, %v1509_v60 }
0x1051   :  { %v3340_v63 = vpop.f32.mrf.mxu1 }
0x1052   :  { %v4137_v2 = vadd.f32 %v3340_v63, %v1518_v6 }
0x1053   :  { %v1591_v4 = vpop.f32.mrf.mxu1 }
0x1054   :  { %v4139_v8 = vadd.f32 %v1591_v4, %v1518_v6  ;;  %1606 = vrot.lane.b32.xlu0 %v4137_v2, %s3607_s16  ;;  %v4157_v19 = vmul.f32 0.35355338, %v4137_v2 }
0x1056   :  { %1604 = vrot.lane.b32.xlu1 %v4139_v8, %s3607_s16  ;;  %v4146_v9 = vmul.f32 0.35355338, %v4139_v8 }
0x1058   :  { %1803 = vrot.lane.b32.xlu0 %v4146_v9, %s3610_s22  ;;  %3345 = vmatprep.mubr.msk.f32.mxu1 %vm300_vm2, %v4146_v9 }
0x105a   :  { %1809 = vrot.lane.b32.xlu1 %v4137_v2, %s3609_s21 }
0x105e   :  { %1807 = vrot.lane.b32.xlu1 %v4139_v8, %s3609_s21  ;;  %s4436_s21 = smov 16  }
0x1062   :  { %1805 = vrot.lane.b32.xlu1 %v4157_v19, %s3610_s22 }
0x10c6   :  { %v1607_v10 = vpop.permute.xlu0 %1606 }
0x10c7   :  { %3341 = vmatprep.subr.msk.mxu1 %vm300_vm2, %v1607_v10 }
0x10c8   :  { %3342 = vmatpush3.xpose.msk.msra.mxu1 %vm300_vm2, %v1607_v10  ;;  %v1605_v11 = vpop.permute.xlu1 %1604 }
0x10c9   :  { %3343 = vmatprep.subr.msk.mxu1 %vm300_vm2, %v1605_v11 }
0x10ca   :  { %v1804_v46 = vpop.permute.xlu0 %1803 }
0x10cc   :  { %3344 = vmatpush3.xpose.msk.msra.mxu1 %vm300_vm2, %v1605_v11  ;;  %v1810_v12 = vpop.permute.xlu1 %1809 }
0x10cd   :  { %3355 = vmatprep.subr.msk.mxu1 %vm300_vm2, %v1810_v12 }
0x10cf   :  { %3346 = vmatmul.mubr.msk.f32.vlgmr.msra.gmra.mxu1 %vm300_vm2, %v4157_v19 }
0x10d0   :  { %v1808_v13 = vpop.permute.xlu1 %1807  ;;  %3356 = vmatpush3.xpose.msk.msra.mxu1 %vm300_vm2, %v1810_v12  ;;  %3359 = vmatprep.mubr.msk.f32.mxu1 %vm300_vm2, %v1804_v46 }
0x10d1   :  { %3357 = vmatprep.subr.msk.mxu1 %vm300_vm2, %v1808_v13 }
0x10d4   :  { %3358 = vmatpush3.xpose.msk.msra.mxu1 %vm300_vm2, %v1808_v13  ;;  %v1806_v14 = vpop.permute.xlu1 %1805 }
0x10d7   :  { %3360 = vmatmul.mubr.msk.f32.vlgmr.msra.gmra.mxu1 %vm300_vm2, %v1806_v14 }
0x118f   :  { %v3347_v41 = vpop.f32.mrf.mxu1 }
0x1190   :  { %v1690_v15 = vadd.f32 %v3347_v41, %v3884_v29 }
0x1191   :  { %v1684_v16 = vpop.f32.mrf.mxu1 }
0x1192   :  { %v1685_v18 = vadd.f32 %v1684_v16, %v3889_v31  ;;  %v1696_v20 = vsel %vm390_vm3, %v1690_v15, -inf }
0x1193   :  { %1697 = vmax.xlane.f32.xlu1 %v1696_v20 }
0x1194   :  { %v1693_v21 = vsel %vm386_vm4, %v1685_v18, -inf }
0x1195   :  { %1694 = vmax.xlane.f32.xlu0 %v1693_v21 }
0x1197   :  { %v3361_v23 = vpop.f32.mrf.mxu1 }
0x1198   :  { %v1891_v24 = vadd.f32 %v3361_v23, %v3884_v29  ;;  %v3561_v23 = vld [vmem:[%s4417_s3 + $0x8] sm:$0x3] }
0x1199   :  { %v1885_v27 = vpop.f32.mrf.mxu1 }
0x119a   :  { %v1886_v32 = vadd.f32 %v1885_v27, %v3889_v31  ;;  %v1897_v7 = vsel %vm390_vm3, %v1891_v24, -inf }
0x119c   :  { %v1894_v35 = vsel %vm386_vm4, %v1886_v32, -inf }
0x119d   :  { %1895 = vmax.xlane.f32.xlu0 %v1894_v35 }
0x11a1   :  { %1898 = vmax.xlane.f32.xlu0 %v1897_v7 }
0x11a4   :  { %1715 = vrot.lane.b32.xlu1 %v4139_v8, %s3608_s1 }
0x11a8   :  { %1918 = vrot.lane.b32.xlu1 %v4137_v2, %s3613_s2 }
0x11ac   :  { %1916 = vrot.lane.b32.xlu1 %v4139_v8, %s3613_s2 }
0x11b7   :  { %1717 = vrot.lane.b32.xlu0 %v4137_v2, %s3608_s1 }
0x121c   :  { %v1698_v31 = vpop.xlane.xlu1 %1697 }
0x121d   :  { %v1700_v29 = vsub.f32 %v1690_v15, %v1698_v31 }
0x121e   :  { %v1695_v36 = vpop.xlane.xlu0 %1694 }
0x121f   :  { %v1703_v62 = vmul.f32 1.442695, %v1700_v29  ;;  %v1699_v37 = vsub.f32 %v1685_v18, %v1695_v36 }
0x1220   :  { %v1716_v43 = vpop.permute.xlu1 %1715 }
0x1221   :  { %3515 = vpow2.f32 %v1703_v62  ;;  %v1701_v38 = vmul.f32 1.442695, %v1699_v37 }
0x1223   :  { %3517 = vpow2.f32 %v1701_v38 }
0x1224   :  { %v1919_v51 = vpop.permute.xlu1 %1918 }
0x1226   :  { %v1896_v39 = vpop.xlane.xlu0 %1895 }
0x1227   :  { %v1900_v0 = vsub.f32 %v1886_v32, %v1896_v39 }
0x1228   :  { %v1917_v56 = vpop.permute.xlu1 %1916 }
0x1229   :  { %v1902_v40 = vmul.f32 1.442695, %v1900_v0 }
0x122a   :  { %v1899_v42 = vpop.xlane.xlu0 %1898 }
0x122b   :  { %3519 = vpow2.f32 %v1902_v40  ;;  %v1901_v22 = vsub.f32 %v1891_v24, %v1899_v42  ;;  %v3562_v24 = vld [vmem:[%s4417_s3] sm:$0xff]  ;;  %s4435_s3 = smov 8  }
0x122d   :  { %v1904_v44 = vmul.f32 1.442695, %v1901_v22 }
0x122e   :  { %v3516_v45 = vpop.eup %3515  ;;  %v1718_v47 = vpop.permute.xlu0 %1717 }
0x122f   :  { %3521 = vpow2.f32 %v1904_v44  ;;  %3348 = vmatprep.subr.msk.mxu0 %vm421_vm5, %v1718_v47  ;;  %v1708_v48 = vsel %vm390_vm3, %v3516_v45, 0.0 }
0x1230   :  { %v3518_v49 = vpop.eup %3517  ;;  %1709 = vadd.xlane.f32.xlu1 %v1708_v48  ;;  %3349 = vmatpush3.msk.msra.mxu0 %vm421_vm5, %v1718_v47 }
0x1231   :  { %3350 = vmatprep.subr.mxu0 %v1716_v43  ;;  %v1705_v50 = vsel %vm386_vm4, %v3518_v49, 0.0 }
0x1232   :  { %1706 = vadd.xlane.f32.xlu0 %v1705_v50  ;;  %3351 = vmatpush3.msra.mxu0 %v1716_v43 }
0x1233   :  { %3362 = vmatprep.subr.msk.mxu0 %vm421_vm5, %v1919_v51 }
0x1238   :  { %v3520_v52 = vpop.eup %3519 }
0x1239   :  { %v1906_v28 = vsel %vm386_vm4, %v3520_v52, 0.0 }
0x123a   :  { %1907 = vadd.xlane.f32.xlu0 %v1906_v28 }
0x123c   :  { %v3522_v54 = vpop.eup %3521 }
0x123d   :  { %v1909_v55 = vsel %vm390_vm3, %v3522_v54, 0.0 }
0x123e   :  { %1910 = vadd.xlane.f32.xlu1 %v1909_v55 }
0x124f   :  { %2008 = vrot.lane.b32.xlu1 %v4139_v8, %s3611_s23 }
0x1250   :  { %2010 = vrot.lane.b32.xlu0 %v4137_v2, %s3611_s23  ;;  %s3623_s23 = smov [#allocation2]  }
0x1253   :  { %2006 = vrot.lane.b32.xlu1 %v4157_v19, %s3612_s0 }
0x1254   :  { %2004 = vrot.lane.b32.xlu0 %v4146_v9, %s3612_s0  ;;  %s2937_s0 = sshll.u32 %s3623_s23, 4  ;;  %s2938_s0 = int_to_ptr.vmem [resolvable:$true] %s2937_s0 }
0x1255   :  { %s3563_s2 = scalar_lea.vmem %s2938_s0, 32  ;;  %p3568_p1 = scmp.lt.s32.totalorder %s2938_s0, %s2938_s0 }
0x1256   :  { %p3564_p0 = scmp.ne.s32.totalorder %s2938_s0, %s3563_s2  ;;  %p3569_p2 = scmp.lt.s32.totalorder %s3563_s2, %s3563_s2 }
0x1258   :  { %p3570_p3 = por %p3569_p2, %p3568_p1 }
0x125a   :  { %p3571_p4 = pnand %p3570_p3, %p3564_p0 }
0x12b9   :  { %v1710_v57 = vpop.xlane.xlu1 %1709 }
0x12ba   :  { %3523 = vrcp.f32 %v1710_v57 }
0x12bb   :  { %v1707_v58 = vpop.xlane.xlu0 %1706 }
0x12bc   :  { %3525 = vrcp.f32 %v1707_v58 }
0x12c3   :  { %v1908_v59 = vpop.xlane.xlu0 %1907 }
0x12c4   :  { %3527 = vrcp.f32 %v1908_v59 }
0x12c7   :  { %v1911_v1 = vpop.xlane.xlu1 %1910  ;;  %v3524_v60 = vpop.eup %3523 }
0x12c8   :  { %3529 = vrcp.f32 %v1911_v1  ;;  %v1714_v63 = vmul.f32 %v3524_v60, %v3516_v45  ;;  %v2011_v4 = vpop.permute.xlu0 %2010 }
0x12c9   :  { %v3526_v61 = vpop.eup %3525 }
0x12ca   :  { %v1712_v6 = vmul.f32 %v3526_v61, %v3518_v49 }
0x12cb   :  { %v2009_v14 = vpop.permute.xlu1 %2008 }
0x12cc   :  { %3352 = vmatprep.mubr.msk.f32.mxu0 %vm386_vm4, %v1712_v6  ;;  %v2005_v13 = vpop.permute.xlu0 %2004 }
0x12cd   :  { %3353 = vmatmul.mubr.msk.f32.vlgmr.msra.gmra.mxu0 %vm386_vm4, %v1714_v63 }
0x12ce   :  { %3363 = vmatpush3.msk.msra.mxu0 %vm421_vm5, %v1919_v51 }
0x12cf   :  { %3364 = vmatprep.subr.mxu0 %v1917_v56  ;;  %v2007_v41 = vpop.permute.xlu1 %2006 }
0x12d0   :  { %3365 = vmatpush3.msra.mxu0 %v1917_v56 }
0x12d1   :  { %v3528_v10 = vpop.eup %3527  ;;  %3369 = vmatprep.subr.msk.mxu0 %vm300_vm2, %v2011_v4 }
0x12d2   :  { %v1913_v11 = vmul.f32 %v3528_v10, %v3520_v52 }
0x12d4   :  { %3366 = vmatprep.mubr.msk.f32.mxu0 %vm386_vm4, %v1913_v11 }
0x12d5   :  { %v3530_v12 = vpop.eup %3529 }
0x12d6   :  { %v1915_v46 = vmul.f32 %v3530_v12, %v3522_v54 }
0x12d8   :  { %3367 = vmatmul.mubr.msk.f32.vlgmr.msra.gmra.mxu0 %vm386_vm4, %v1915_v46 }
0x12d9   :  { %3370 = vmatpush3.xpose.msk.msra.mxu0 %vm300_vm2, %v2011_v4  ;;  %3373 = vmatprep.mubr.msk.f32.mxu0 %vm300_vm2, %v2005_v13 }
0x12da   :  { %3371 = vmatprep.subr.msk.mxu0 %vm300_vm2, %v2009_v14 }
0x12dd   :  { %3372 = vmatpush3.xpose.msk.msra.mxu0 %vm300_vm2, %v2009_v14 }
0x12e0   :  { %3374 = vmatmul.mubr.msk.f32.vlgmr.msra.gmra.mxu0 %vm300_vm2, %v2007_v41 }
0x138d   :  { %v4215_v15 = vpop.f32.mrf.mxu0 }
0x138f   :  { %v4217_v16 = vpop.f32.mrf.mxu0 }
0x1398   :  { %v4219_v18 = vpop.f32.mrf.mxu0 }
0x139a   :  { %v4221_v20 = vpop.f32.mrf.mxu0 }
0x13a0   :  { %v3375_v21 = vpop.f32.mrf.mxu0 }
0x13a1   :  { %v2092_v27 = vadd.f32 %v3561_v23, %v3375_v21 }
0x13a2   :  { %v2086_v32 = vpop.f32.mrf.mxu0 }
0x13a3   :  { %v2087_v35 = vadd.f32 %v3562_v24, %v2086_v32  ;;  %v2098_v7 = vsel %vm390_vm3, %v2092_v27, -inf }
0x13a4   :  { %2099 = vmax.xlane.f32.xlu1 %v2098_v7  ;;  %v3032_v7 = vld [vmem:[%s4419_s5 + $0x20] sm:$0xff] }
0x13a5   :  { %v2095_v31 = vsel %vm386_vm4, %v2087_v35, -inf }
0x13a6   :  { %2096 = vmax.xlane.f32.xlu0 %v2095_v31 }
0x13b5   :  { %2117 = vrot.lane.b32.xlu1 %v4139_v8, %s3614_s24 }
0x13b9   :  { %2211 = vrot.lane.b32.xlu1 %v4137_v2, %s3615_s25 }
0x13bd   :  { %2209 = vrot.lane.b32.xlu1 %v4139_v8, %s3615_s25 }
0x13c1   :  { %2207 = vrot.lane.b32.xlu1 %v4157_v19, %s3616_s26 }
0x142d   :  { %v2100_v29 = vpop.xlane.xlu1 %2099 }
0x142e   :  { %v2102_v36 = vsub.f32 %v2092_v27, %v2100_v29 }
0x142f   :  { %v2097_v62 = vpop.xlane.xlu0 %2096 }
0x1430   :  { %v2105_v37 = vmul.f32 1.442695, %v2102_v36  ;;  %v2101_v38 = vsub.f32 %v2087_v35, %v2097_v62  ;;  %v3033_v35 = vld [vmem:[%s4419_s5 + $0x28] sm:$0xff] }
0x1431   :  { %v2118_v44 = vpop.permute.xlu1 %2117 }
0x1432   :  { %3531 = vpow2.f32 %v2105_v37  ;;  %v2103_v39 = vmul.f32 1.442695, %v2101_v38 }
0x1434   :  { %3533 = vpow2.f32 %v2103_v39 }
0x1435   :  { %v2212_v47 = vpop.permute.xlu1 %2211 }
0x1439   :  { %v2210_v52 = vpop.permute.xlu1 %2209 }
0x143d   :  { %v2208_v28 = vpop.permute.xlu1 %2207 }
0x143f   :  { %v3532_v0 = vpop.eup %3531 }
0x1440   :  { %v2110_v40 = vsel %vm390_vm3, %v3532_v0, 0.0 }
0x1441   :  { %v3534_v42 = vpop.eup %3533  ;;  %2111 = vadd.xlane.f32.xlu0 %v2110_v40 }
0x1442   :  { %v2107_v22 = vsel %vm386_vm4, %v3534_v42, 0.0 }
0x1445   :  { %2108 = vadd.xlane.f32.xlu0 %v2107_v22 }
0x145b   :  { %2119 = vrot.lane.b32.xlu0 %v4137_v2, %s3614_s24 }
0x145f   :  { %2205 = vrot.lane.b32.xlu0 %v4146_v9, %s3616_s26 }
0x14ca   :  { %v2112_v19 = vpop.xlane.xlu0 %2111 }
0x14cb   :  { %3535 = vrcp.f32 %v2112_v19 }
0x14ce   :  { %v2109_v43 = vpop.xlane.xlu0 %2108 }
0x14cf   :  { %3537 = vrcp.f32 %v2109_v43 }
0x14d2   :  { %v2120_v45 = vpop.permute.xlu0 %2119 }
0x14d3   :  { %3376 = vmatprep.subr.msk.mxu1 %vm421_vm5, %v2120_v45 }
0x14d4   :  { %3377 = vmatpush3.msk.msra.mxu1 %vm421_vm5, %v2120_v45 }
0x14d5   :  { %3378 = vmatprep.subr.mxu1 %v2118_v44 }
0x14d6   :  { %3379 = vmatpush3.msra.mxu1 %v2118_v44  ;;  %v2206_v9 = vpop.permute.xlu0 %2205 }
0x14d7   :  { %3383 = vmatprep.subr.msk.mxu1 %vm300_vm2, %v2212_v47 }
0x14d8   :  { %v3536_v48 = vpop.eup %3535 }
0x14d9   :  { %v2116_v51 = vmul.f32 %v3536_v48, %v3532_v0 }
0x14dc   :  { %v3538_v49 = vpop.eup %3537 }
0x14dd   :  { %v2114_v50 = vmul.f32 %v3538_v49, %v3534_v42 }
0x14df   :  { %3380 = vmatprep.mubr.msk.f32.mxu1 %vm386_vm4, %v2114_v50 }
0x14e0   :  { %3381 = vmatmul.mubr.msk.f32.vlgmr.msra.gmra.mxu1 %vm386_vm4, %v2116_v51 }
0x14e1   :  { %3384 = vmatpush3.xpose.msk.msra.mxu1 %vm300_vm2, %v2212_v47  ;;  %3387 = vmatprep.mubr.msk.f32.mxu1 %vm300_vm2, %v2206_v9 }
0x14e2   :  { %3385 = vmatprep.subr.msk.mxu1 %vm300_vm2, %v2210_v52 }
0x14e5   :  { %3386 = vmatpush3.xpose.msk.msra.mxu1 %vm300_vm2, %v2210_v52 }
0x14e8   :  { %3388 = vmatmul.mubr.msk.f32.vlgmr.msra.gmra.mxu1 %vm300_vm2, %v2208_v28 }
0x15a0   :  { %v3382_v54 = vpop.f32.mrf.mxu1 }
0x15a2   :  { %v2196_v55 = vpop.f32.mrf.mxu1 }
0x15a8   :  { %v3389_v56 = vpop.f32.mrf.mxu1 }
0x15a9   :  { %v2293_v57 = vadd.f32 %v3561_v23, %v3389_v56 }
0x15aa   :  { %v2287_v58 = vpop.f32.mrf.mxu1 }
0x15ab   :  { %v2288_v59 = vadd.f32 %v3562_v24, %v2287_v58  ;;  %v2299_v1 = vsel %vm390_vm3, %v2293_v57, -inf  ;;  %v3034_v24 = vld [vmem:[%s4419_s5 + $0x30] sm:$0xff] }
0x15ac   :  { %2300 = vmax.xlane.f32.xlu1 %v2299_v1  ;;  %v3040_v1 = vld [vmem:[%s4420_s6 + $0x30] sm:$0xff] }
0x15ad   :  { %v2296_v60 = vsel %vm386_vm4, %v2288_v59, -inf }
0x15ae   :  { %2297 = vmax.xlane.f32.xlu0 %v2296_v60  ;;  %v3039_v60 = vld [vmem:[%s4420_s6 + $0x28] sm:$0xff] }
0x15bd   :  { %2318 = vrot.lane.b32.xlu1 %v4139_v8, %s3617_s27 }
0x15c1   :  { %2408 = vrot.lane.b32.xlu1 %v4221_v20, %s4435_s3 }
0x15c5   :  { %2410 = vrot.lane.b32.xlu1 %v4219_v18, %s4435_s3 }
0x15c9   :  { %2418 = vrot.lane.b32.xlu1 %v3382_v54, %s4436_s21 }
0x1635   :  { %v2301_v61 = vpop.xlane.xlu1 %2300 }
0x1636   :  { %v2303_v6 = vsub.f32 %v2293_v57, %v2301_v61  ;;  %v3038_v61 = vld [vmem:[%s4420_s6 + $0x20] sm:$0xff] }
0x1637   :  { %v2298_v63 = vpop.xlane.xlu0 %2297 }
0x1638   :  { %v2306_v4 = vmul.f32 1.442695, %v2303_v6  ;;  %v2302_v10 = vsub.f32 %v2288_v59, %v2298_v63  ;;  %v3041_v59 = vld [vmem:[%s4420_s6 + $0x38] sm:$0xff] }
0x1639   :  { %v2319_v20 = vpop.permute.xlu1 %2318  ;;  %3408 = vmatprep.subr.mxu1 %v3041_v59 }
0x163a   :  { %3539 = vpow2.f32 %v2306_v4  ;;  %v2304_v11 = vmul.f32 1.442695, %v2302_v10  ;;  %3409 = vmatpush3.msra.mxu1 %v3041_v59 }
0x163b   :  { %3410 = vmatprep.subr.mxu1 %v3040_v1 }
0x163c   :  { %3541 = vpow2.f32 %v2304_v11  ;;  %3411 = vmatpush3.msra.mxu1 %v3040_v1 }
0x163d   :  { %v2409_v36 = vpop.permute.xlu1 %2408  ;;  %3412 = vmatprep.subr.mxu1 %v3039_v60 }
0x163e   :  { %v2430_v39 = vsel %vm300_vm2, %v4217_v16, %v2409_v36  ;;  %v2527_v16 = vrot.slane %v4124_v25, %v1223_v3  ;;  %3413 = vmatpush3.msra.mxu1 %v3039_v60 }
0x163f   :  { %3414 = vmatprep.subr.mxu1 %v3038_v61 }
0x1640   :  { %3415 = vmatpush3.msra.mxu1 %v3038_v61 }
0x1641   :  { %v2411_v62 = vpop.permute.xlu1 %2410 }
0x1642   :  { %v2431_v40 = vsel %vm300_vm2, %v4215_v15, %v2411_v62 }
0x1645   :  { %v2419_v37 = vpop.permute.xlu1 %2418 }
0x1646   :  { %v2433_v19 = vsel %vm1128_vm6, %v2431_v40, %v2419_v37 }
0x1647   :  { %v3540_v12 = vpop.eup %3539 }
0x1648   :  { %v2311_v46 = vsel %vm390_vm3, %v3540_v12, 0.0 }
0x1649   :  { %v3542_v8 = vpop.eup %3541  ;;  %2312 = vadd.xlane.f32.xlu0 %v2311_v46  ;;  %v2559_v46 = vrot.slane %v4124_v25, %v1255_v33  ;;  %v3051_v33 = vld [vmem:[%s4421_s7 + $0x78] sm:$0xff] }
0x164a   :  { %v2308_v13 = vsel %vm386_vm4, %v3542_v8, 0.0 }
0x164d   :  { %2309 = vadd.xlane.f32.xlu0 %v2308_v13 }
0x1663   :  { %2320 = vrot.lane.b32.xlu0 %v4137_v2, %s3617_s27  ;;  %v3035_v2 = vld [vmem:[%s4419_s5 + $0x38] sm:$0xff] }
0x1667   :  { %2416 = vrot.lane.b32.xlu0 %v2196_v55, %s4436_s21 }
0x16d2   :  { %v2313_v14 = vpop.xlane.xlu0 %2312 }
0x16d3   :  { %3543 = vrcp.f32 %v2313_v14  ;;  %v2565_v14 = vrot.slane %v4124_v25, %v1261_v34  ;;  %v3050_v34 = vld [vmem:[%s4421_s7 + $0x70] sm:$0xff] }
0x16d6   :  { %v2310_v41 = vpop.xlane.xlu0 %2309 }
0x16d7   :  { %3545 = vrcp.f32 %v2310_v41 }
0x16da   :  { %v2321_v18 = vpop.permute.xlu0 %2320 }
0x16db   :  { %3390 = vmatprep.subr.msk.mxu0 %vm421_vm5, %v2321_v18 }
0x16dc   :  { %3391 = vmatpush3.msk.msra.mxu0 %vm421_vm5, %v2321_v18 }
0x16dd   :  { %3392 = vmatprep.subr.mxu0 %v2319_v20 }
0x16de   :  { %3393 = vmatpush3.msra.mxu0 %v2319_v20  ;;  %v2417_v38 = vpop.permute.xlu0 %2416 }
0x16df   :  { %3397 = vmatprep.subr.mxu0 %v3035_v2  ;;  %v2432_v42 = vsel %vm1128_vm6, %v2430_v39, %v2417_v38 }
0x16e0   :  { %v3544_v21 = vpop.eup %3543 }
0x16e1   :  { %v2317_v32 = vmul.f32 %v3544_v21, %v3540_v12 }
0x16e4   :  { %v3546_v23 = vpop.eup %3545 }
0x16e5   :  { %v2315_v27 = vmul.f32 %v3546_v23, %v3542_v8 }
0x16e7   :  { %3394 = vmatprep.mubr.msk.f32.mxu0 %vm386_vm4, %v2315_v27 }
0x16e8   :  { %3395 = vmatmul.mubr.msk.f32.vlgmr.msra.gmra.mxu0 %vm386_vm4, %v2317_v32  ;;  %v3049_v32 = vld [vmem:[%s4421_s7 + $0x68] sm:$0xff] }
0x16e9   :  { %3398 = vmatpush3.msra.mxu0 %v3035_v2  ;;  %v3048_v2 = vld [vmem:[%s4421_s7 + $0x60] sm:$0xff] }
0x16ea   :  { %3399 = vmatprep.subr.mxu0 %v3034_v24 }
0x16eb   :  { %3400 = vmatpush3.msra.mxu0 %v3034_v24  ;;  %v3047_v24 = vld [vmem:[%s4421_s7 + $0x58] sm:$0xff] }
0x16ec   :  { %3401 = vmatprep.subr.mxu0 %v3033_v35 }
0x16ed   :  { %3402 = vmatpush3.msra.mxu0 %v3033_v35  ;;  %v3046_v35 = vld [vmem:[%s4421_s7 + $0x50] sm:$0xff] }
0x16ee   :  { %3403 = vmatprep.subr.mxu0 %v3032_v7 }
0x16ef   :  { %3404 = vmatpush3.msra.mxu0 %v3032_v7  ;;  %v3045_v7 = vld [vmem:[%s4421_s7 + $0x48] sm:$0xff] }
0x16f0   :  { %3419 = vmatprep.subr.mxu0 %v3051_v33 }
0x17a8   :  { %v3396_v31 = vpop.f32.mrf.mxu0 }
0x17a9   :  { %2426 = vrot.lane.b32.xlu1 %v3396_v31, %s4437_s29  ;;  %v3044_v31 = vld [vmem:[%s4421_s7 + $0x40] sm:$0xff] }
0x17aa   :  { %v2397_v29 = vpop.f32.mrf.mxu0 }
0x17ab   :  { %2424 = vrot.lane.b32.xlu0 %v2397_v29, %s4437_s29  ;;  %v2576_v29 = vrot.slane %v4124_v25, %v1271_v53 }
0x181b   :  { %v2427_v0 = vpop.permute.xlu1 %2426 }
0x181c   :  { %v2435_v44 = vsel %vm1131_vm7, %v2433_v19, %v2427_v0 }
0x181d   :  { %v2425_v22 = vpop.permute.xlu0 %2424 }
0x181e   :  { %v2434_v43 = vsel %vm1131_vm7, %v2432_v42, %v2425_v22 }
0x181f   :  { %3405 = vmatprep.mubr.msk.f32.mxu0 %vm162_vm0, %v2434_v43 }
0x1820   :  { %3406 = vmatmul.mubr.msk.f32.vlgmr.msra.gmra.mxu0 %vm162_vm0, %v2435_v44 }
0x1821   :  { %3420 = vmatpush3.msra.mxu0 %v3051_v33  ;;  %v3055_v33 = vld [vmem:[%s4423_s9 + $0x1] ss:$0 sm:$0xff] }
0x1822   :  { %3421 = vmatprep.subr.mxu0 %v3050_v34 }
0x1823   :  { %3422 = vmatpush3.msra.mxu0 %v3050_v34 }
0x1824   :  { %3423 = vmatprep.subr.mxu0 %v3049_v32 }
0x1825   :  { %3424 = vmatpush3.msra.mxu0 %v3049_v32 }
0x1826   :  { %3425 = vmatprep.subr.mxu0 %v3048_v2 }
0x1827   :  { %3426 = vmatpush3.msra.mxu0 %v3048_v2 }
0x1828   :  { %3427 = vmatprep.subr.mxu0 %v3047_v24 }
0x1829   :  { %3428 = vmatpush3.msra.mxu0 %v3047_v24 }
0x182a   :  { %3429 = vmatprep.subr.mxu0 %v3046_v35 }
0x182b   :  { %3430 = vmatpush3.msra.mxu0 %v3046_v35 }
0x182c   :  { %3431 = vmatprep.subr.mxu0 %v3045_v7 }
0x182d   :  { %3432 = vmatpush3.msra.mxu0 %v3045_v7 }
0x182e   :  { %3433 = vmatprep.subr.mxu0 %v3044_v31 }
0x182f   :  { %3434 = vmatpush3.msra.mxu0 %v3044_v31 }
0x18e0   :  { %v3407_v45 = vpop.f32.mrf.mxu0 }
0x18e1   :  { %v2523_v15 = vadd.f32 %v3407_v45, %v4096_v26 }
0x18e2   :  { %v2513_v47 = vpop.f32.mrf.mxu0 }
0x18e3   :  { %v4301_v48 = vadd.f32 %v2527_v16, %v2523_v15  ;;  %v2522_v49 = vadd.f32 %v2513_v47, %v4099_v30 }
0x18e5   :  { %v4304_v50 = vadd.f32 %v2527_v16, %v2522_v49  ;;  %v2533_v51 = vsel %vm166_vm1, %v4301_v48, 0.0 }
0x18e6   :  { %2534 = vadd.xlane.f32.xlu1 %v2533_v51 }
0x18e7   :  { %v2530_v9 = vsel %vm162_vm0, %v4304_v50, 0.0 }
0x18e8   :  { %2531 = vadd.xlane.f32.xlu0 %v2530_v9 }
0x196f   :  { %v2535_v52 = vpop.xlane.xlu1 %2534 }
0x1970   :  { %v2537_v3 = vmul.f32 0.03125, %v2535_v52 }
0x1971   :  { %v2532_v28 = vpop.xlane.xlu0 %2531 }
0x1972   :  { %v2536_v54 = vmul.f32 0.03125, %v2532_v28  ;;  %v2539_v26 = vsub.f32 %v4301_v48, %v2537_v3  ;;  %v2771_v28 = vrot.slane %v4124_v25, %v1466_v17 }
0x1974   :  { %v2538_v55 = vsub.f32 %v4304_v50, %v2536_v54  ;;  %v2541_v57 = vmul.f32 %v2539_v26, %v2539_v26 }
0x1976   :  { %v2540_v56 = vmul.f32 %v2538_v55, %v2538_v55  ;;  %v2545_v58 = vsel %vm166_vm1, %v2541_v57, 0.0 }
0x1978   :  { %v2542_v30 = vsel %vm162_vm0, %v2540_v56, 0.0 }
0x1979   :  { %2543 = vadd.xlane.f32.xlu0 %v2542_v30 }
0x197d   :  { %2546 = vadd.xlane.f32.xlu0 %v2545_v58 }
0x1a02   :  { %v2544_v6 = vpop.xlane.xlu0 %2543 }
0x1a03   :  { %v2548_v63 = vmul.f32 0.03125, %v2544_v6 }
0x1a05   :  { %v2550_v4 = vadd.f32 1e-06, %v2548_v63 }
0x1a06   :  { %v2547_v10 = vpop.xlane.xlu0 %2546 }
0x1a07   :  { %3547 = vrsqrt.f32 %v2550_v4  ;;  %v2549_v11 = vmul.f32 0.03125, %v2547_v10  ;;  %v2854_v4 = vld [vmem:[%s4425_s11 + $0x18] sm:$0xff]  ;;  %v3621_v10 = vmov 0.0  }
0x1a08   :  { %3438 = vmatprep.subr.mxu1 %v3621_v10 }
0x1a09   :  { %v2551_v12 = vadd.f32 1e-06, %v2549_v11  ;;  %v2853_v11 = vld [vmem:[%s4425_s11 + $0x10] sm:$0xff] }
0x1a0b   :  { %3549 = vrsqrt.f32 %v2551_v12  ;;  %v2852_v12 = vld [vmem:[%s4425_s11 + $0x8] sm:$0xff] }
0x1a14   :  { %v3548_v8 = vpop.eup %3547 }
0x1a15   :  { %v2554_v13 = vmul.f32 %v3548_v8, %v2538_v55 }
0x1a17   :  { %v2560_v41 = vmul.f32 %v2559_v46, %v2554_v13 }
0x1a18   :  { %v3550_v18 = vpop.eup %3549 }
0x1a19   :  { %v2555_v20 = vmul.f32 %v3550_v18, %v2539_v26  ;;  %v2566_v21 = vadd.f32 %v2565_v14, %v2560_v41 }
0x1a1b   :  { %v2561_v23 = vmul.f32 %v2559_v46, %v2555_v20  ;;  %3416 = vmatprep.mubr.msk.f32.mxu1 %vm162_vm0, %v2566_v21  ;;  %v2851_v46 = vld [vmem:[%s4425_s11] sm:$0xff] }
0x1a1d   :  { %v2567_v27 = vadd.f32 %v2565_v14, %v2561_v23  ;;  %v3054_v23 = vld [vmem:[%s4423_s9] ss:$0 sm:$0xff] }
0x1a1f   :  { %3417 = vmatmul.mubr.msk.f32.vlgmr.msra.gmra.mxu1 %vm162_vm0, %v2567_v27 }
0x1a20   :  { %3446 = vmatprep.mubr.msk.f32.mxu1 %vm3622_vm9, %v3621_v10  ;;  %3439 = vmatpush3.msra.mxu1 %v2854_v4 }
0x1a21   :  { %3440 = vmatprep.subr.mxu1 %v3621_v10 }
0x1a22   :  { %3441 = vmatpush3.msra.mxu1 %v2853_v11 }
0x1a23   :  { %3442 = vmatprep.subr.mxu1 %v3621_v10 }
0x1a24   :  { %3443 = vmatpush3.msra.mxu1 %v2852_v12 }
0x1a25   :  { %3444 = vmatprep.subr.mxu1 %v3621_v10 }
0x1a26   :  { %3445 = vmatpush3.msra.mxu1 %v2851_v46 }
0x1adf   :  { %v3418_v36 = vpop.f32.mrf.mxu1 }
0x1ae0   :  { %v2655_v62 = vadd.f32 %v3418_v36, %v2576_v29 }
0x1ae1   :  { %v2649_v37 = vpop.f32.mrf.mxu1 }
0x1ae2   :  { %v2659_v38 = vmul.f32 %v2655_v62, %v2655_v62  ;;  %v2650_v39 = vadd.f32 %v2649_v37, %v2576_v29 }
0x1ae4   :  { %v2661_v0 = vmul.f32 %v2659_v38, %v2655_v62  ;;  %v2658_v40 = vmul.f32 %v2650_v39, %v2650_v39 }
0x1ae6   :  { %v2663_v42 = vmul.f32 0.044715, %v2661_v0  ;;  %v2660_v22 = vmul.f32 %v2658_v40, %v2650_v39 }
0x1ae8   :  { %v2665_v19 = vadd.f32 %v2663_v42, %v2655_v62  ;;  %v2662_v43 = vmul.f32 0.044715, %v2660_v22 }
0x1aea   :  { %v2667_v44 = vmul.f32 0.7978846, %v2665_v19  ;;  %v2664_v16 = vadd.f32 %v2662_v43, %v2650_v39 }
0x1aec   :  { %3551 = vtanh.f32 %v2667_v44  ;;  %v2666_v45 = vmul.f32 0.7978846, %v2664_v16 }
0x1aee   :  { %3553 = vtanh.f32 %v2666_v45 }
0x1af9   :  { %v3552_v15 = vpop.eup %3551 }
0x1afa   :  { %v2671_v47 = vadd.f32 1.0, %v3552_v15 }
0x1afb   :  { %v3554_v49 = vpop.eup %3553 }
0x1afc   :  { %v2670_v53 = vadd.f32 1.0, %v3554_v49  ;;  %v2673_v51 = vmul.f32 0.5, %v2671_v47 }
0x1afe   :  { %v2672_v9 = vmul.f32 0.5, %v2670_v53  ;;  %v2675_v3 = vmul.f32 %v2673_v51, %v2655_v62  ;;  %v3056_v51 = vld [vmem:[%s4424_s10] ss:$0 sm:$0xff] }
0x1b00   :  { %v2674_v52 = vmul.f32 %v2672_v9, %v2650_v39 }
0x1b02   :  { %3435 = vmatprep.mubr.msk.f32.mxu0 %vm1380_vm8, %v2674_v52  ;;  %v3057_v52 = vld [vmem:[%s4424_s10 + $0x1] ss:$0 sm:$0xff] }
0x1b03   :  { %3436 = vmatmul.mubr.msk.f32.vlgmr.msra.gmra.mxu0 %vm1380_vm8, %v2675_v3 }
0x1bc3   :  { %v3437_v54 = vpop.f32.mrf.mxu0 }
0x1bc4   :  { %v2767_v26 = vadd.f32 %v3437_v54, %v4301_v48 }
0x1bc5   :  { %v2757_v55 = vpop.f32.mrf.mxu0 }
0x1bc6   :  { %v2773_v56 = vadd.f32 %v2771_v28, %v2767_v26  ;;  %v2766_v30 = vadd.f32 %v2757_v55, %v4304_v50 }
0x1bc8   :  { %v2772_v57 = vadd.f32 %v2771_v28, %v2766_v30  ;;  %v2779_v58 = vsel %vm166_vm1, %v2773_v56, 0.0 }
0x1bc9   :  { %2780 = vadd.xlane.f32.xlu0 %v2779_v58 }
0x1bca   :  { %v2776_v59 = vsel %vm162_vm0, %v2772_v57, 0.0 }
0x1bcd   :  { %2777 = vadd.xlane.f32.xlu0 %v2776_v59 }
0x1c52   :  { %v2781_v1 = vpop.xlane.xlu0 %2780 }
0x1c53   :  { %v2783_v60 = vmul.f32 0.03125, %v2781_v1 }
0x1c55   :  { %v2785_v61 = vsub.f32 %v2773_v56, %v2783_v60 }
0x1c56   :  { %v2778_v5 = vpop.xlane.xlu0 %2777 }
0x1c57   :  { %v2782_v6 = vmul.f32 0.03125, %v2778_v5  ;;  %v2787_v17 = vmul.f32 %v2785_v61, %v2785_v61 }
0x1c59   :  { %v2784_v25 = vsub.f32 %v2772_v57, %v2782_v6  ;;  %v2791_v48 = vsel %vm166_vm1, %v2787_v17, 0.0 }
0x1c5a   :  { %2792 = vadd.xlane.f32.xlu1 %v2791_v48 }
0x1c5b   :  { %v2786_v63 = vmul.f32 %v2784_v25, %v2784_v25 }
0x1c5d   :  { %v2788_v50 = vsel %vm162_vm0, %v2786_v63, 0.0 }
0x1c5e   :  { %2789 = vadd.xlane.f32.xlu1 %v2788_v50 }
0x1ce3   :  { %v2793_v8 = vpop.xlane.xlu1 %2792 }
0x1ce4   :  { %v2795_v13 = vmul.f32 0.03125, %v2793_v8 }
0x1ce6   :  { %v2797_v14 = vadd.f32 1e-06, %v2795_v13 }
0x1ce7   :  { %v2790_v41 = vpop.xlane.xlu1 %2789 }
0x1ce8   :  { %3555 = vrsqrt.f32 %v2797_v14  ;;  %v2794_v18 = vmul.f32 0.03125, %v2790_v41 }
0x1cea   :  { %v2796_v20 = vadd.f32 1e-06, %v2794_v18 }
0x1cec   :  { %3557 = vrsqrt.f32 %v2796_v20 }
0x1cf5   :  { %v3556_v21 = vpop.eup %3555 }
0x1cf6   :  { %v2801_v27 = vmul.f32 %v3556_v21, %v2785_v61 }
0x1cf8   :  { %v2807_v34 = vmul.f32 %v3054_v23, %v2801_v27 }
0x1cf9   :  { %v3558_v32 = vpop.eup %3557 }
0x1cfa   :  { %v2813_v2 = vadd.f32 %v3055_v33, %v2807_v34  ;;  %v2800_v24 = vmul.f32 %v3558_v32, %v2784_v25 }
0x1cfc   :  { %2815 = vst.msk [vmem:[%s4426_s12 + $0x8] sm:$0x3] %vm166_vm1, %v2813_v2  ;;  %v2816_v35 = vsel %vm166_vm1, %v2813_v2, 0.0  ;;  %v2806_v7 = vmul.f32 %v3054_v23, %v2800_v24 }
0x1cfd   :  { %v2817_v31 = vrot.slane %v2816_v35, 4 }
0x1cfe   :  { %v2812_v29 = vadd.f32 %v3055_v33, %v2806_v7 }
0x1cff   :  { %v2818_v36 = vadd.f32 %v2817_v31, %v2816_v35 }
0x1d00   :  { %2814 = vst.msk [vmem:[%s4426_s12] sm:$0xff] %vm162_vm0, %v2812_v29 }
0x1d01   :  { %v2819_v62 = vrot.slane %v2818_v36, 2 }
0x1d03   :  { %v2820_v37 = vadd.f32 %v2819_v62, %v2818_v36 }
0x1d05   :  { %v2821_v38 = vrot.slane %v2820_v37, 1 }
0x1d07   :  { %v2822_v39 = vadd.f32 %v2821_v38, %v2820_v37 }
0x1d09   :  { %v2824_v0 = vmul.f32 0.5, %v2822_v39 }
0x1d0b   :  { %v2825_v40 = vsub.f32 %v2813_v2, %v2824_v0 }
0x1d0d   :  { %v2826_v42 = vmul.f32 %v2825_v40, %v2825_v40 }
0x1d0f   :  { %v2827_v22 = vsel %vm166_vm1, %v2826_v42, 0.0 }
0x1d10   :  { %v2828_v19 = vrot.slane %v2827_v22, 4 }
0x1d12   :  { %v2829_v43 = vadd.f32 %v2828_v19, %v2827_v22 }
0x1d14   :  { %v2830_v44 = vrot.slane %v2829_v43, 2 }
0x1d16   :  { %v2831_v16 = vadd.f32 %v2830_v44, %v2829_v43 }
0x1d18   :  { %v2832_v45 = vrot.slane %v2831_v16, 1 }
0x1d1a   :  { %v2833_v15 = vadd.f32 %v2832_v45, %v2831_v16 }
0x1d1c   :  { %v2834_v47 = vmul.f32 0.5, %v2833_v15 }
0x1d1e   :  { %v2835_v49 = vadd.f32 1e-05, %v2834_v47 }
0x1d20   :  { %3559 = vrsqrt.f32 %v2835_v49 }
0x1d2d   :  { %v3560_v53 = vpop.eup %3559 }
0x1d2e   :  { %v2837_v9 = vmul.f32 %v3560_v53, %v2825_v40 }
0x1d30   :  { %v2843_v3 = vmul.f32 %v3056_v51, %v2837_v9 }
0x1d32   :  { %v2849_v28 = vadd.f32 %v3057_v52, %v2843_v3 }
0x1d34   :  { %3447 = vmatmul.mubr.msk.f32.vlgmr.msra.gmra.mxu1 %vm162_vm0, %v2849_v28  ;;  %2850 = vst.msk [vmem:[#allocation2] sm:$0x3] %vm166_vm1, %v2849_v28 }
0x1d35   :  { %3574 = shalt.err (!%p3571_p4)
}
0x1d36   :  { %2940 = dma.vmem_to_hbm [thread:$0]  %s2938_s0, 32, %s4427_s13, [#allocation3]  }
0x1d37   :  { %s3624_s10 = smov [#allocation4]  }
0x1d38   :  { %s2947_s26 = sshll.u32 %s3624_s10, 4  ;;  %s2948_s26 = int_to_ptr.vmem [resolvable:$true] %s2947_s26 }
0x1d39   :  { %s3583_s27 = scalar_lea.vmem %s2948_s26, 32  ;;  %p3588_p6 = scmp.lt.s32.totalorder %s2948_s26, %s2948_s26 }
0x1d3a   :  { %p3584_p5 = scmp.ne.s32.totalorder %s2948_s26, %s3583_s27  ;;  %p3589_p7 = scmp.lt.s32.totalorder %s3583_s27, %s3583_s27 }
0x1d3c   :  { %p3590_p8 = por %p3589_p7, %p3588_p6 }
0x1d3e   :  { %p3591_p9 = pnand %p3590_p8, %p3584_p5 }
0x1df4   :  { %v2924_v54 = vpop.f32.mrf.mxu1 }
0x1df5   :  { %2928 = vst [vmem:[#allocation4] sm:$0x3] %v2924_v54 }
0x1df6   :  { %v3448_v26 = vpop.f32.mrf.mxu1 }
0x1df7   :  { %3594 = shalt.err (!%p3591_p9)
}
0x1df8   :  { %2950 = dma.vmem_to_hbm [thread:$0]  %s2948_s26, 32, %s4428_s14, [#allocation5]  }
0x1df9   :  { %3603 = dma.done.wait [#allocation3], 32  }
0x1dfa   :  { %3604 = vsyncadd [#allocation3], 4294967264 }
0x1dfb   :  { %3605 = dma.done.wait [#allocation5], 32  }
0x1dfc   :  { %3606 = vsyncadd [#allocation5], 4294967264 }
0x1dfd   :  { %2959 = vsyncpa [#allocation3], 1 }
0x1dfe   :  { %2960 = vsyncpa [#allocation5], 1 }

</bundles_post_ra>
